<compile_context>
chip_gen: v7x
topology: tpu7x:2x2x1
jax: 0.10.0
libtpu: 0.0.40
codegen_flags: <defaults>
</compile_context>

<pallas_src>
import jax
import jax.numpy as jnp
from jax.experimental import pallas as pl
from jax.experimental.pallas import tpu as pltpu


def make_gru_kernel(seq_len: int, batch: int, hidden: int):
    S, B, H = seq_len, batch, hidden

    def gru_kernel(x_ref,
                   wr_ih_ref, wz_ih_ref, wn_ih_ref,
                   wr_hh_ref, wz_hh_ref, wn_hh_ref,
                   b_r_ref, b_z_ref, b_in_ref, b_hn_ref,
                   fc_w_ref, fc_b_ref,
                   out_ref):
        # ---- hoisted, time-invariant input projections (off the serial chain) ----
        x_flat = x_ref[...]                                      # (S*B, I), time-major
        gi_r = jnp.dot(x_flat, wr_ih_ref[...],
                       preferred_element_type=jnp.float32) + b_r_ref[...]   # (S*B, H)
        gi_z = jnp.dot(x_flat, wz_ih_ref[...],
                       preferred_element_type=jnp.float32) + b_z_ref[...]
        gi_n = jnp.dot(x_flat, wn_ih_ref[...],
                       preferred_element_type=jnp.float32) + b_in_ref[...]

        w_r = wr_hh_ref[...]
        w_z = wz_hh_ref[...]
        w_n = wn_hh_ref[...]
        b_hn = b_hn_ref[...]

        # ---- serial recurrence: h in registers, loop fully unrolled (S static) ----
        h = jnp.zeros((B, H), jnp.float32)
        for t in range(S):
            lo = t * B
            g_r = gi_r[lo:lo + B, :]
            g_z = gi_z[lo:lo + B, :]
            g_n = gi_n[lo:lo + B, :]
            h_r = jnp.dot(h, w_r, preferred_element_type=jnp.float32)
            h_z = jnp.dot(h, w_z, preferred_element_type=jnp.float32)
            h_n = jnp.dot(h, w_n, preferred_element_type=jnp.float32) + b_hn
            r = jax.nn.sigmoid(g_r + h_r)
            z = jax.nn.sigmoid(g_z + h_z)
            n = jnp.tanh(g_n + r * h_n)
            h = n + z * (h - n)              # == (1 - z) * n + z * h

        # ---- fc(h_n[-1]) ----
        out = jnp.dot(h, fc_w_ref[...],
                      preferred_element_type=jnp.float32) + fc_b_ref[...]
        out_ref[...] = out.astype(out_ref.dtype)

    return gru_kernel


def gru_model_forward(x, params):
    """x: (batch, seq, input) -> (batch, 1), matching GRUModel.forward."""
    B, S, I = x.shape
    H = params["w_hh"].shape[1]
    O = params["fc_w"].shape[0]

    # Time-major and flattened over (seq, batch) for the hoisted input projection.
    x_flat = jnp.transpose(x, (1, 0, 2)).reshape(S * B, I)

    # Split PyTorch-layout weights into per-gate, right-multiply form.
    w_ih, w_hh = params["w_ih"], params["w_hh"]          # (3H, I), (3H, H)
    b_ih, b_hh = params["b_ih"], params["b_hh"]          # (3H,),  (3H,)
    wr_ih, wz_ih, wn_ih = w_ih[0:H].T, w_ih[H:2 * H].T, w_ih[2 * H:3 * H].T
    wr_hh, wz_hh, wn_hh = w_hh[0:H].T, w_hh[H:2 * H].T, w_hh[2 * H:3 * H].T
    # b_hh_r / b_hh_z fold into the hoisted projection; b_hh_n stays separate
    # (it must sit inside the reset-gate multiplication).
    b_r = (b_ih[0:H] + b_hh[0:H]).reshape(1, H)
    b_z = (b_ih[H:2 * H] + b_hh[H:2 * H]).reshape(1, H)
    b_in = b_ih[2 * H:3 * H].reshape(1, H)
    b_hn = b_hh[2 * H:3 * H].reshape(1, H)
    fc_w_T = params["fc_w"].T                            # (H, O)
    fc_b = params["fc_b"].reshape(1, O)

    vmem = pl.BlockSpec(memory_space=pltpu.VMEM)
    kernel = make_gru_kernel(S, B, H)
    out = pl.pallas_call(
        kernel,
        out_shape=jax.ShapeDtypeStruct((B, O), jnp.float32),
        in_specs=[vmem] * 13,
        out_specs=vmem,
    )(x_flat,
      wr_ih, wz_ih, wn_ih,
      wr_hh, wz_hh, wn_hh,
      b_r, b_z, b_in, b_hn,
      fc_w_T, fc_b)
    return out


def gru_model_reference(x, params):
    """Pure-JAX reference with PyTorch GRU semantics (gate order [r, z, n])."""
    B, S, I = x.shape
    H = params["w_hh"].shape[1]
    w_ih_T, w_hh_T = params["w_ih"].T, params["w_hh"].T
    b_ih, b_hh = params["b_ih"], params["b_hh"]
    h = jnp.zeros((B, H), jnp.float32)
    for t in range(S):
        gi = x[:, t, :] @ w_ih_T + b_ih
        gh = h @ w_hh_T + b_hh
        i_r, i_z, i_n = gi[:, :H], gi[:, H:2 * H], gi[:, 2 * H:]
        h_r, h_z, h_n = gh[:, :H], gh[:, H:2 * H], gh[:, 2 * H:]
        r = jax.nn.sigmoid(i_r + h_r)
        z = jax.nn.sigmoid(i_z + h_z)
        n = jnp.tanh(i_n + r * h_n)
        h = (1.0 - z) * n + z * h
    return h @ params["fc_w"].T + params["fc_b"]


def init_params(key, input_size, hidden_size, output_size):
    """PyTorch-layout params, uniform(-1/sqrt(H), 1/sqrt(H)) like nn.GRU / nn.Linear."""
    H, I, O = hidden_size, input_size, output_size
    k = 1.0 / jnp.sqrt(jnp.asarray(H, jnp.float32))
    keys = jax.random.split(key, 6)
    u = lambda kk, shape, bound: jax.random.uniform(
        kk, shape, jnp.float32, minval=-bound, maxval=bound)
    return {
        "w_ih": u(keys[0], (3 * H, I), k),   # weight_ih_l0, gates [r, z, n]
        "w_hh": u(keys[1], (3 * H, H), k),   # weight_hh_l0
        "b_ih": u(keys[2], (3 * H,), k),
        "b_hh": u(keys[3], (3 * H,), k),
        "fc_w": u(keys[4], (O, H), k),       # nn.Linear(H, O).weight
        "fc_b": u(keys[5], (O,), k),
    }


if __name__ == "__main__":
    # Small shapes consistent with the module: x is (batch, seq, num_features)
    batch, seq, input_size = 2, 8, 12
    hidden_size, output_size = 64, 1

    key = jax.random.PRNGKey(0)
    kx, kp = jax.random.split(key)
    x = jax.random.normal(kx, (batch, seq, input_size), jnp.float32)
    params = init_params(kp, input_size, hidden_size, output_size)

    out = gru_model_forward(x, params)
    out = jax.block_until_ready(out)

    ref = gru_model_reference(x, params)
    assert out.shape == (batch, output_size)
    assert jnp.allclose(out, ref, atol=1e-4, rtol=1e-4), (out, ref)

    print("KERNEL_OK")
</pallas_src>

<mosaic_0001>
module attributes {stable_mosaic.version = 11 : i64} {
  func.func @gru_kernel(%arg0: memref<16x12xf32, #tpu.memory_space<vmem>>, %arg1: memref<12x64xf32, #tpu.memory_space<vmem>>, %arg2: memref<12x64xf32, #tpu.memory_space<vmem>>, %arg3: memref<12x64xf32, #tpu.memory_space<vmem>>, %arg4: memref<64x64xf32, #tpu.memory_space<vmem>>, %arg5: memref<64x64xf32, #tpu.memory_space<vmem>>, %arg6: memref<64x64xf32, #tpu.memory_space<vmem>>, %arg7: memref<1x64xf32, #tpu.memory_space<vmem>>, %arg8: memref<1x64xf32, #tpu.memory_space<vmem>>, %arg9: memref<1x64xf32, #tpu.memory_space<vmem>>, %arg10: memref<1x64xf32, #tpu.memory_space<vmem>>, %arg11: memref<64x1xf32, #tpu.memory_space<vmem>>, %arg12: memref<1x1xf32, #tpu.memory_space<vmem>>, %arg13: memref<2x1xf32, #tpu.memory_space<vmem>>) attributes {dimension_semantics = [], scalar_prefetch = 0 : i64, scratch_operands = 0 : i64, tpu.core_type = #tpu.core_type<tc>} {
    %c0 = arith.constant 0 : index
    %c0_0 = arith.constant 0 : index
    %0 = vector.load %arg0[%c0, %c0_0] : memref<16x12xf32, #tpu.memory_space<vmem>>, vector<16x12xf32>
    %c0_1 = arith.constant 0 : index
    %c0_2 = arith.constant 0 : index
    %1 = vector.load %arg1[%c0_1, %c0_2] : memref<12x64xf32, #tpu.memory_space<vmem>>, vector<12x64xf32>
    %cst = arith.constant dense<0.000000e+00> : vector<16x64xf32>
    %2 = tpu.matmul %0, %1, %cst {dimension_numbers = #tpu.dot_dimension_numbers<[1], [0], [0], [1], [0, 0, 1, 1], [], []>} : vector<16x12xf32>, vector<12x64xf32>, vector<16x64xf32> -> vector<16x64xf32>
    %c0_3 = arith.constant 0 : index
    %c0_4 = arith.constant 0 : index
    %3 = vector.load %arg7[%c0_3, %c0_4] : memref<1x64xf32, #tpu.memory_space<vmem>>, vector<1x64xf32>
    %4 = vector.broadcast %3 : vector<1x64xf32> to vector<16x64xf32>
    %5 = arith.addf %2, %4 : vector<16x64xf32>
    %c0_5 = arith.constant 0 : index
    %c0_6 = arith.constant 0 : index
    %6 = vector.load %arg2[%c0_5, %c0_6] : memref<12x64xf32, #tpu.memory_space<vmem>>, vector<12x64xf32>
    %cst_7 = arith.constant dense<0.000000e+00> : vector<16x64xf32>
    %7 = tpu.matmul %0, %6, %cst_7 {dimension_numbers = #tpu.dot_dimension_numbers<[1], [0], [0], [1], [0, 0, 1, 1], [], []>} : vector<16x12xf32>, vector<12x64xf32>, vector<16x64xf32> -> vector<16x64xf32>
    %c0_8 = arith.constant 0 : index
    %c0_9 = arith.constant 0 : index
    %8 = vector.load %arg8[%c0_8, %c0_9] : memref<1x64xf32, #tpu.memory_space<vmem>>, vector<1x64xf32>
    %9 = vector.broadcast %8 : vector<1x64xf32> to vector<16x64xf32>
    %10 = arith.addf %7, %9 : vector<16x64xf32>
    %c0_10 = arith.constant 0 : index
    %c0_11 = arith.constant 0 : index
    %11 = vector.load %arg3[%c0_10, %c0_11] : memref<12x64xf32, #tpu.memory_space<vmem>>, vector<12x64xf32>
    %cst_12 = arith.constant dense<0.000000e+00> : vector<16x64xf32>
    %12 = tpu.matmul %0, %11, %cst_12 {dimension_numbers = #tpu.dot_dimension_numbers<[1], [0], [0], [1], [0, 0, 1, 1], [], []>} : vector<16x12xf32>, vector<12x64xf32>, vector<16x64xf32> -> vector<16x64xf32>
    %c0_13 = arith.constant 0 : index
    %c0_14 = arith.constant 0 : index
    %13 = vector.load %arg9[%c0_13, %c0_14] : memref<1x64xf32, #tpu.memory_space<vmem>>, vector<1x64xf32>
    %14 = vector.broadcast %13 : vector<1x64xf32> to vector<16x64xf32>
    %15 = arith.addf %12, %14 : vector<16x64xf32>
    %c0_15 = arith.constant 0 : index
    %c0_16 = arith.constant 0 : index
    %16 = vector.load %arg4[%c0_15, %c0_16] : memref<64x64xf32, #tpu.memory_space<vmem>>, vector<64x64xf32>
    %c0_17 = arith.constant 0 : index
    %c0_18 = arith.constant 0 : index
    %17 = vector.load %arg5[%c0_17, %c0_18] : memref<64x64xf32, #tpu.memory_space<vmem>>, vector<64x64xf32>
    %c0_19 = arith.constant 0 : index
    %c0_20 = arith.constant 0 : index
    %18 = vector.load %arg6[%c0_19, %c0_20] : memref<64x64xf32, #tpu.memory_space<vmem>>, vector<64x64xf32>
    %c0_21 = arith.constant 0 : index
    %c0_22 = arith.constant 0 : index
    %19 = vector.load %arg10[%c0_21, %c0_22] : memref<1x64xf32, #tpu.memory_space<vmem>>, vector<1x64xf32>
    %cst_23 = arith.constant 0.000000e+00 : f32
    %20 = vector.broadcast %cst_23 : f32 to vector<2x64xf32>
    %21 = vector.extract_strided_slice %5 {offsets = [0, 0], sizes = [2, 64], strides = [1, 1]} : vector<16x64xf32> to vector<2x64xf32>
    %22 = vector.extract_strided_slice %10 {offsets = [0, 0], sizes = [2, 64], strides = [1, 1]} : vector<16x64xf32> to vector<2x64xf32>
    %23 = vector.extract_strided_slice %15 {offsets = [0, 0], sizes = [2, 64], strides = [1, 1]} : vector<16x64xf32> to vector<2x64xf32>
    %cst_24 = arith.constant dense<0.000000e+00> : vector<2x64xf32>
    %24 = tpu.matmul %20, %16, %cst_24 {dimension_numbers = #tpu.dot_dimension_numbers<[1], [0], [0], [1], [0, 0, 1, 1], [], []>} : vector<2x64xf32>, vector<64x64xf32>, vector<2x64xf32> -> vector<2x64xf32>
    %cst_25 = arith.constant dense<0.000000e+00> : vector<2x64xf32>
    %25 = tpu.matmul %20, %17, %cst_25 {dimension_numbers = #tpu.dot_dimension_numbers<[1], [0], [0], [1], [0, 0, 1, 1], [], []>} : vector<2x64xf32>, vector<64x64xf32>, vector<2x64xf32> -> vector<2x64xf32>
    %cst_26 = arith.constant dense<0.000000e+00> : vector<2x64xf32>
    %26 = tpu.matmul %20, %18, %cst_26 {dimension_numbers = #tpu.dot_dimension_numbers<[1], [0], [0], [1], [0, 0, 1, 1], [], []>} : vector<2x64xf32>, vector<64x64xf32>, vector<2x64xf32> -> vector<2x64xf32>
    %27 = vector.broadcast %19 : vector<1x64xf32> to vector<2x64xf32>
    %28 = arith.addf %26, %27 : vector<2x64xf32>
    %29 = arith.addf %21, %24 : vector<2x64xf32>
    %30 = arith.negf %29 : vector<2x64xf32>
    %31 = math.exp %30 : vector<2x64xf32>
    %cst_27 = arith.constant 1.000000e+00 : f32
    %32 = vector.broadcast %cst_27 : f32 to vector<2x64xf32>
    %33 = arith.addf %32, %31 : vector<2x64xf32>
    %34 = arith.divf %32, %33 : vector<2x64xf32>
    %35 = arith.addf %22, %25 : vector<2x64xf32>
    %36 = arith.negf %35 : vector<2x64xf32>
    %37 = math.exp %36 : vector<2x64xf32>
    %cst_28 = arith.constant 1.000000e+00 : f32
    %38 = vector.broadcast %cst_28 : f32 to vector<2x64xf32>
    %39 = arith.addf %38, %37 : vector<2x64xf32>
    %40 = arith.divf %38, %39 : vector<2x64xf32>
    %41 = arith.mulf %34, %28 : vector<2x64xf32>
    %42 = arith.addf %23, %41 : vector<2x64xf32>
    %43 = math.tanh %42 : vector<2x64xf32>
    %44 = arith.subf %20, %43 : vector<2x64xf32>
    %45 = arith.mulf %40, %44 : vector<2x64xf32>
    %46 = arith.addf %43, %45 : vector<2x64xf32>
    %47 = vector.extract_strided_slice %5 {offsets = [2, 0], sizes = [2, 64], strides = [1, 1]} : vector<16x64xf32> to vector<2x64xf32>
    %48 = vector.extract_strided_slice %10 {offsets = [2, 0], sizes = [2, 64], strides = [1, 1]} : vector<16x64xf32> to vector<2x64xf32>
    %49 = vector.extract_strided_slice %15 {offsets = [2, 0], sizes = [2, 64], strides = [1, 1]} : vector<16x64xf32> to vector<2x64xf32>
    %cst_29 = arith.constant dense<0.000000e+00> : vector<2x64xf32>
    %50 = tpu.matmul %46, %16, %cst_29 {dimension_numbers = #tpu.dot_dimension_numbers<[1], [0], [0], [1], [0, 0, 1, 1], [], []>} : vector<2x64xf32>, vector<64x64xf32>, vector<2x64xf32> -> vector<2x64xf32>
    %cst_30 = arith.constant dense<0.000000e+00> : vector<2x64xf32>
    %51 = tpu.matmul %46, %17, %cst_30 {dimension_numbers = #tpu.dot_dimension_numbers<[1], [0], [0], [1], [0, 0, 1, 1], [], []>} : vector<2x64xf32>, vector<64x64xf32>, vector<2x64xf32> -> vector<2x64xf32>
    %cst_31 = arith.constant dense<0.000000e+00> : vector<2x64xf32>
    %52 = tpu.matmul %46, %18, %cst_31 {dimension_numbers = #tpu.dot_dimension_numbers<[1], [0], [0], [1], [0, 0, 1, 1], [], []>} : vector<2x64xf32>, vector<64x64xf32>, vector<2x64xf32> -> vector<2x64xf32>
    %53 = vector.broadcast %19 : vector<1x64xf32> to vector<2x64xf32>
    %54 = arith.addf %52, %53 : vector<2x64xf32>
    %55 = arith.addf %47, %50 : vector<2x64xf32>
    %56 = arith.negf %55 : vector<2x64xf32>
    %57 = math.exp %56 : vector<2x64xf32>
    %cst_32 = arith.constant 1.000000e+00 : f32
    %58 = vector.broadcast %cst_32 : f32 to vector<2x64xf32>
    %59 = arith.addf %58, %57 : vector<2x64xf32>
    %60 = arith.divf %58, %59 : vector<2x64xf32>
    %61 = arith.addf %48, %51 : vector<2x64xf32>
    %62 = arith.negf %61 : vector<2x64xf32>
    %63 = math.exp %62 : vector<2x64xf32>
    %cst_33 = arith.constant 1.000000e+00 : f32
    %64 = vector.broadcast %cst_33 : f32 to vector<2x64xf32>
    %65 = arith.addf %64, %63 : vector<2x64xf32>
    %66 = arith.divf %64, %65 : vector<2x64xf32>
    %67 = arith.mulf %60, %54 : vector<2x64xf32>
    %68 = arith.addf %49, %67 : vector<2x64xf32>
    %69 = math.tanh %68 : vector<2x64xf32>
    %70 = arith.subf %46, %69 : vector<2x64xf32>
    %71 = arith.mulf %66, %70 : vector<2x64xf32>
    %72 = arith.addf %69, %71 : vector<2x64xf32>
    %73 = vector.extract_strided_slice %5 {offsets = [4, 0], sizes = [2, 64], strides = [1, 1]} : vector<16x64xf32> to vector<2x64xf32>
    %74 = vector.extract_strided_slice %10 {offsets = [4, 0], sizes = [2, 64], strides = [1, 1]} : vector<16x64xf32> to vector<2x64xf32>
    %75 = vector.extract_strided_slice %15 {offsets = [4, 0], sizes = [2, 64], strides = [1, 1]} : vector<16x64xf32> to vector<2x64xf32>
    %cst_34 = arith.constant dense<0.000000e+00> : vector<2x64xf32>
    %76 = tpu.matmul %72, %16, %cst_34 {dimension_numbers = #tpu.dot_dimension_numbers<[1], [0], [0], [1], [0, 0, 1, 1], [], []>} : vector<2x64xf32>, vector<64x64xf32>, vector<2x64xf32> -> vector<2x64xf32>
    %cst_35 = arith.constant dense<0.000000e+00> : vector<2x64xf32>
    %77 = tpu.matmul %72, %17, %cst_35 {dimension_numbers = #tpu.dot_dimension_numbers<[1], [0], [0], [1], [0, 0, 1, 1], [], []>} : vector<2x64xf32>, vector<64x64xf32>, vector<2x64xf32> -> vector<2x64xf32>
    %cst_36 = arith.constant dense<0.000000e+00> : vector<2x64xf32>
    %78 = tpu.matmul %72, %18, %cst_36 {dimension_numbers = #tpu.dot_dimension_numbers<[1], [0], [0], [1], [0, 0, 1, 1], [], []>} : vector<2x64xf32>, vector<64x64xf32>, vector<2x64xf32> -> vector<2x64xf32>
    %79 = vector.broadcast %19 : vector<1x64xf32> to vector<2x64xf32>
    %80 = arith.addf %78, %79 : vector<2x64xf32>
    %81 = arith.addf %73, %76 : vector<2x64xf32>
    %82 = arith.negf %81 : vector<2x64xf32>
    %83 = math.exp %82 : vector<2x64xf32>
    %cst_37 = arith.constant 1.000000e+00 : f32
    %84 = vector.broadcast %cst_37 : f32 to vector<2x64xf32>
    %85 = arith.addf %84, %83 : vector<2x64xf32>
    %86 = arith.divf %84, %85 : vector<2x64xf32>
    %87 = arith.addf %74, %77 : vector<2x64xf32>
    %88 = arith.negf %87 : vector<2x64xf32>
    %89 = math.exp %88 : vector<2x64xf32>
    %cst_38 = arith.constant 1.000000e+00 : f32
    %90 = vector.broadcast %cst_38 : f32 to vector<2x64xf32>
    %91 = arith.addf %90, %89 : vector<2x64xf32>
    %92 = arith.divf %90, %91 : vector<2x64xf32>
    %93 = arith.mulf %86, %80 : vector<2x64xf32>
    %94 = arith.addf %75, %93 : vector<2x64xf32>
    %95 = math.tanh %94 : vector<2x64xf32>
    %96 = arith.subf %72, %95 : vector<2x64xf32>
    %97 = arith.mulf %92, %96 : vector<2x64xf32>
    %98 = arith.addf %95, %97 : vector<2x64xf32>
    %99 = vector.extract_strided_slice %5 {offsets = [6, 0], sizes = [2, 64], strides = [1, 1]} : vector<16x64xf32> to vector<2x64xf32>
    %100 = vector.extract_strided_slice %10 {offsets = [6, 0], sizes = [2, 64], strides = [1, 1]} : vector<16x64xf32> to vector<2x64xf32>
    %101 = vector.extract_strided_slice %15 {offsets = [6, 0], sizes = [2, 64], strides = [1, 1]} : vector<16x64xf32> to vector<2x64xf32>
    %cst_39 = arith.constant dense<0.000000e+00> : vector<2x64xf32>
    %102 = tpu.matmul %98, %16, %cst_39 {dimension_numbers = #tpu.dot_dimension_numbers<[1], [0], [0], [1], [0, 0, 1, 1], [], []>} : vector<2x64xf32>, vector<64x64xf32>, vector<2x64xf32> -> vector<2x64xf32>
    %cst_40 = arith.constant dense<0.000000e+00> : vector<2x64xf32>
    %103 = tpu.matmul %98, %17, %cst_40 {dimension_numbers = #tpu.dot_dimension_numbers<[1], [0], [0], [1], [0, 0, 1, 1], [], []>} : vector<2x64xf32>, vector<64x64xf32>, vector<2x64xf32> -> vector<2x64xf32>
    %cst_41 = arith.constant dense<0.000000e+00> : vector<2x64xf32>
    %104 = tpu.matmul %98, %18, %cst_41 {dimension_numbers = #tpu.dot_dimension_numbers<[1], [0], [0], [1], [0, 0, 1, 1], [], []>} : vector<2x64xf32>, vector<64x64xf32>, vector<2x64xf32> -> vector<2x64xf32>
    %105 = vector.broadcast %19 : vector<1x64xf32> to vector<2x64xf32>
    %106 = arith.addf %104, %105 : vector<2x64xf32>
    %107 = arith.addf %99, %102 : vector<2x64xf32>
    %108 = arith.negf %107 : vector<2x64xf32>
    %109 = math.exp %108 : vector<2x64xf32>
    %cst_42 = arith.constant 1.000000e+00 : f32
    %110 = vector.broadcast %cst_42 : f32 to vector<2x64xf32>
    %111 = arith.addf %110, %109 : vector<2x64xf32>
    %112 = arith.divf %110, %111 : vector<2x64xf32>
    %113 = arith.addf %100, %103 : vector<2x64xf32>
    %114 = arith.negf %113 : vector<2x64xf32>
    %115 = math.exp %114 : vector<2x64xf32>
    %cst_43 = arith.constant 1.000000e+00 : f32
    %116 = vector.broadcast %cst_43 : f32 to vector<2x64xf32>
    %117 = arith.addf %116, %115 : vector<2x64xf32>
    %118 = arith.divf %116, %117 : vector<2x64xf32>
    %119 = arith.mulf %112, %106 : vector<2x64xf32>
    %120 = arith.addf %101, %119 : vector<2x64xf32>
    %121 = math.tanh %120 : vector<2x64xf32>
    %122 = arith.subf %98, %121 : vector<2x64xf32>
    %123 = arith.mulf %118, %122 : vector<2x64xf32>
    %124 = arith.addf %121, %123 : vector<2x64xf32>
    %125 = vector.extract_strided_slice %5 {offsets = [8, 0], sizes = [2, 64], strides = [1, 1]} : vector<16x64xf32> to vector<2x64xf32>
    %126 = vector.extract_strided_slice %10 {offsets = [8, 0], sizes = [2, 64], strides = [1, 1]} : vector<16x64xf32> to vector<2x64xf32>
    %127 = vector.extract_strided_slice %15 {offsets = [8, 0], sizes = [2, 64], strides = [1, 1]} : vector<16x64xf32> to vector<2x64xf32>
    %cst_44 = arith.constant dense<0.000000e+00> : vector<2x64xf32>
    %128 = tpu.matmul %124, %16, %cst_44 {dimension_numbers = #tpu.dot_dimension_numbers<[1], [0], [0], [1], [0, 0, 1, 1], [], []>} : vector<2x64xf32>, vector<64x64xf32>, vector<2x64xf32> -> vector<2x64xf32>
    %cst_45 = arith.constant dense<0.000000e+00> : vector<2x64xf32>
    %129 = tpu.matmul %124, %17, %cst_45 {dimension_numbers = #tpu.dot_dimension_numbers<[1], [0], [0], [1], [0, 0, 1, 1], [], []>} : vector<2x64xf32>, vector<64x64xf32>, vector<2x64xf32> -> vector<2x64xf32>
    %cst_46 = arith.constant dense<0.000000e+00> : vector<2x64xf32>
    %130 = tpu.matmul %124, %18, %cst_46 {dimension_numbers = #tpu.dot_dimension_numbers<[1], [0], [0], [1], [0, 0, 1, 1], [], []>} : vector<2x64xf32>, vector<64x64xf32>, vector<2x64xf32> -> vector<2x64xf32>
    %131 = vector.broadcast %19 : vector<1x64xf32> to vector<2x64xf32>
    %132 = arith.addf %130, %131 : vector<2x64xf32>
    %133 = arith.addf %125, %128 : vector<2x64xf32>
    %134 = arith.negf %133 : vector<2x64xf32>
    %135 = math.exp %134 : vector<2x64xf32>
    %cst_47 = arith.constant 1.000000e+00 : f32
    %136 = vector.broadcast %cst_47 : f32 to vector<2x64xf32>
    %137 = arith.addf %136, %135 : vector<2x64xf32>
    %138 = arith.divf %136, %137 : vector<2x64xf32>
    %139 = arith.addf %126, %129 : vector<2x64xf32>
    %140 = arith.negf %139 : vector<2x64xf32>
    %141 = math.exp %140 : vector<2x64xf32>
    %cst_48 = arith.constant 1.000000e+00 : f32
    %142 = vector.broadcast %cst_48 : f32 to vector<2x64xf32>
    %143 = arith.addf %142, %141 : vector<2x64xf32>
    %144 = arith.divf %142, %143 : vector<2x64xf32>
    %145 = arith.mulf %138, %132 : vector<2x64xf32>
    %146 = arith.addf %127, %145 : vector<2x64xf32>
    %147 = math.tanh %146 : vector<2x64xf32>
    %148 = arith.subf %124, %147 : vector<2x64xf32>
    %149 = arith.mulf %144, %148 : vector<2x64xf32>
    %150 = arith.addf %147, %149 : vector<2x64xf32>
    %151 = vector.extract_strided_slice %5 {offsets = [10, 0], sizes = [2, 64], strides = [1, 1]} : vector<16x64xf32> to vector<2x64xf32>
    %152 = vector.extract_strided_slice %10 {offsets = [10, 0], sizes = [2, 64], strides = [1, 1]} : vector<16x64xf32> to vector<2x64xf32>
    %153 = vector.extract_strided_slice %15 {offsets = [10, 0], sizes = [2, 64], strides = [1, 1]} : vector<16x64xf32> to vector<2x64xf32>
    %cst_49 = arith.constant dense<0.000000e+00> : vector<2x64xf32>
    %154 = tpu.matmul %150, %16, %cst_49 {dimension_numbers = #tpu.dot_dimension_numbers<[1], [0], [0], [1], [0, 0, 1, 1], [], []>} : vector<2x64xf32>, vector<64x64xf32>, vector<2x64xf32> -> vector<2x64xf32>
    %cst_50 = arith.constant dense<0.000000e+00> : vector<2x64xf32>
    %155 = tpu.matmul %150, %17, %cst_50 {dimension_numbers = #tpu.dot_dimension_numbers<[1], [0], [0], [1], [0, 0, 1, 1], [], []>} : vector<2x64xf32>, vector<64x64xf32>, vector<2x64xf32> -> vector<2x64xf32>
    %cst_51 = arith.constant dense<0.000000e+00> : vector<2x64xf32>
    %156 = tpu.matmul %150, %18, %cst_51 {dimension_numbers = #tpu.dot_dimension_numbers<[1], [0], [0], [1], [0, 0, 1, 1], [], []>} : vector<2x64xf32>, vector<64x64xf32>, vector<2x64xf32> -> vector<2x64xf32>
    %157 = vector.broadcast %19 : vector<1x64xf32> to vector<2x64xf32>
    %158 = arith.addf %156, %157 : vector<2x64xf32>
    %159 = arith.addf %151, %154 : vector<2x64xf32>
    %160 = arith.negf %159 : vector<2x64xf32>
    %161 = math.exp %160 : vector<2x64xf32>
    %cst_52 = arith.constant 1.000000e+00 : f32
    %162 = vector.broadcast %cst_52 : f32 to vector<2x64xf32>
    %163 = arith.addf %162, %161 : vector<2x64xf32>
    %164 = arith.divf %162, %163 : vector<2x64xf32>
    %165 = arith.addf %152, %155 : vector<2x64xf32>
    %166 = arith.negf %165 : vector<2x64xf32>
    %167 = math.exp %166 : vector<2x64xf32>
    %cst_53 = arith.constant 1.000000e+00 : f32
    %168 = vector.broadcast %cst_53 : f32 to vector<2x64xf32>
    %169 = arith.addf %168, %167 : vector<2x64xf32>
    %170 = arith.divf %168, %169 : vector<2x64xf32>
    %171 = arith.mulf %164, %158 : vector<2x64xf32>
    %172 = arith.addf %153, %171 : vector<2x64xf32>
    %173 = math.tanh %172 : vector<2x64xf32>
    %174 = arith.subf %150, %173 : vector<2x64xf32>
    %175 = arith.mulf %170, %174 : vector<2x64xf32>
    %176 = arith.addf %173, %175 : vector<2x64xf32>
    %177 = vector.extract_strided_slice %5 {offsets = [12, 0], sizes = [2, 64], strides = [1, 1]} : vector<16x64xf32> to vector<2x64xf32>
    %178 = vector.extract_strided_slice %10 {offsets = [12, 0], sizes = [2, 64], strides = [1, 1]} : vector<16x64xf32> to vector<2x64xf32>
    %179 = vector.extract_strided_slice %15 {offsets = [12, 0], sizes = [2, 64], strides = [1, 1]} : vector<16x64xf32> to vector<2x64xf32>
    %cst_54 = arith.constant dense<0.000000e+00> : vector<2x64xf32>
    %180 = tpu.matmul %176, %16, %cst_54 {dimension_numbers = #tpu.dot_dimension_numbers<[1], [0], [0], [1], [0, 0, 1, 1], [], []>} : vector<2x64xf32>, vector<64x64xf32>, vector<2x64xf32> -> vector<2x64xf32>
    %cst_55 = arith.constant dense<0.000000e+00> : vector<2x64xf32>
    %181 = tpu.matmul %176, %17, %cst_55 {dimension_numbers = #tpu.dot_dimension_numbers<[1], [0], [0], [1], [0, 0, 1, 1], [], []>} : vector<2x64xf32>, vector<64x64xf32>, vector<2x64xf32> -> vector<2x64xf32>
    %cst_56 = arith.constant dense<0.000000e+00> : vector<2x64xf32>
    %182 = tpu.matmul %176, %18, %cst_56 {dimension_numbers = #tpu.dot_dimension_numbers<[1], [0], [0], [1], [0, 0, 1, 1], [], []>} : vector<2x64xf32>, vector<64x64xf32>, vector<2x64xf32> -> vector<2x64xf32>
    %183 = vector.broadcast %19 : vector<1x64xf32> to vector<2x64xf32>
    %184 = arith.addf %182, %183 : vector<2x64xf32>
    %185 = arith.addf %177, %180 : vector<2x64xf32>
    %186 = arith.negf %185 : vector<2x64xf32>
    %187 = math.exp %186 : vector<2x64xf32>
    %cst_57 = arith.constant 1.000000e+00 : f32
    %188 = vector.broadcast %cst_57 : f32 to vector<2x64xf32>
    %189 = arith.addf %188, %187 : vector<2x64xf32>
    %190 = arith.divf %188, %189 : vector<2x64xf32>
    %191 = arith.addf %178, %181 : vector<2x64xf32>
    %192 = arith.negf %191 : vector<2x64xf32>
    %193 = math.exp %192 : vector<2x64xf32>
    %cst_58 = arith.constant 1.000000e+00 : f32
    %194 = vector.broadcast %cst_58 : f32 to vector<2x64xf32>
    %195 = arith.addf %194, %193 : vector<2x64xf32>
    %196 = arith.divf %194, %195 : vector<2x64xf32>
    %197 = arith.mulf %190, %184 : vector<2x64xf32>
    %198 = arith.addf %179, %197 : vector<2x64xf32>
    %199 = math.tanh %198 : vector<2x64xf32>
    %200 = arith.subf %176, %199 : vector<2x64xf32>
    %201 = arith.mulf %196, %200 : vector<2x64xf32>
    %202 = arith.addf %199, %201 : vector<2x64xf32>
    %203 = vector.extract_strided_slice %5 {offsets = [14, 0], sizes = [2, 64], strides = [1, 1]} : vector<16x64xf32> to vector<2x64xf32>
    %204 = vector.extract_strided_slice %10 {offsets = [14, 0], sizes = [2, 64], strides = [1, 1]} : vector<16x64xf32> to vector<2x64xf32>
    %205 = vector.extract_strided_slice %15 {offsets = [14, 0], sizes = [2, 64], strides = [1, 1]} : vector<16x64xf32> to vector<2x64xf32>
    %cst_59 = arith.constant dense<0.000000e+00> : vector<2x64xf32>
    %206 = tpu.matmul %202, %16, %cst_59 {dimension_numbers = #tpu.dot_dimension_numbers<[1], [0], [0], [1], [0, 0, 1, 1], [], []>} : vector<2x64xf32>, vector<64x64xf32>, vector<2x64xf32> -> vector<2x64xf32>
    %cst_60 = arith.constant dense<0.000000e+00> : vector<2x64xf32>
    %207 = tpu.matmul %202, %17, %cst_60 {dimension_numbers = #tpu.dot_dimension_numbers<[1], [0], [0], [1], [0, 0, 1, 1], [], []>} : vector<2x64xf32>, vector<64x64xf32>, vector<2x64xf32> -> vector<2x64xf32>
    %cst_61 = arith.constant dense<0.000000e+00> : vector<2x64xf32>
    %208 = tpu.matmul %202, %18, %cst_61 {dimension_numbers = #tpu.dot_dimension_numbers<[1], [0], [0], [1], [0, 0, 1, 1], [], []>} : vector<2x64xf32>, vector<64x64xf32>, vector<2x64xf32> -> vector<2x64xf32>
    %209 = vector.broadcast %19 : vector<1x64xf32> to vector<2x64xf32>
    %210 = arith.addf %208, %209 : vector<2x64xf32>
    %211 = arith.addf %203, %206 : vector<2x64xf32>
    %212 = arith.negf %211 : vector<2x64xf32>
    %213 = math.exp %212 : vector<2x64xf32>
    %cst_62 = arith.constant 1.000000e+00 : f32
    %214 = vector.broadcast %cst_62 : f32 to vector<2x64xf32>
    %215 = arith.addf %214, %213 : vector<2x64xf32>
    %216 = arith.divf %214, %215 : vector<2x64xf32>
    %217 = arith.addf %204, %207 : vector<2x64xf32>
    %218 = arith.negf %217 : vector<2x64xf32>
    %219 = math.exp %218 : vector<2x64xf32>
    %cst_63 = arith.constant 1.000000e+00 : f32
    %220 = vector.broadcast %cst_63 : f32 to vector<2x64xf32>
    %221 = arith.addf %220, %219 : vector<2x64xf32>
    %222 = arith.divf %220, %221 : vector<2x64xf32>
    %223 = arith.mulf %216, %210 : vector<2x64xf32>
    %224 = arith.addf %205, %223 : vector<2x64xf32>
    %225 = math.tanh %224 : vector<2x64xf32>
    %226 = arith.subf %202, %225 : vector<2x64xf32>
    %227 = arith.mulf %222, %226 : vector<2x64xf32>
    %228 = arith.addf %225, %227 : vector<2x64xf32>
    %c0_64 = arith.constant 0 : index
    %c0_65 = arith.constant 0 : index
    %229 = vector.load %arg11[%c0_64, %c0_65] : memref<64x1xf32, #tpu.memory_space<vmem>>, vector<64x1xf32>
    %cst_66 = arith.constant dense<0.000000e+00> : vector<2x1xf32>
    %230 = tpu.matmul %228, %229, %cst_66 {dimension_numbers = #tpu.dot_dimension_numbers<[1], [0], [0], [1], [0, 0, 1, 1], [], []>} : vector<2x64xf32>, vector<64x1xf32>, vector<2x1xf32> -> vector<2x1xf32>
    %c0_67 = arith.constant 0 : index
    %c0_68 = arith.constant 0 : index
    %231 = vector.load %arg12[%c0_67, %c0_68] : memref<1x1xf32, #tpu.memory_space<vmem>>, vector<1x1xf32>
    %232 = vector.broadcast %231 : vector<1x1xf32> to vector<2x1xf32>
    %233 = arith.addf %230, %232 : vector<2x1xf32>
    %c0_69 = arith.constant 0 : index
    %c0_70 = arith.constant 0 : index
    %234 = vector.load %arg13[%c0_69, %c0_70] : memref<2x1xf32, #tpu.memory_space<vmem>>, vector<2x1xf32>
    tpu.vector_store %arg13[%c0_69, %c0_70], %233 {strides = array<i32>} : memref<2x1xf32, #tpu.memory_space<vmem>>, vector<2x1xf32>,
    return
  }
}

</mosaic_0001>

<bundles_post_ra>
// kernel: tpu_custom_call.1
= control target key start
LH: loop header
LB: loop body
LE: loop exit
PB: predicated region body
PF: predicated region fallthrough
CT: control target
= control target key end

     0   :  { %s4395_s0 = inlined_call_operand.vmem [shape: f32[16,12], index: 0, kind: input, shape index: {}]   ;;  %s4396_s1 = inlined_call_operand.hbm [shape: f32[12,64], index: 1, kind: input, shape index: {}]   ;;  %s4397_s2 = inlined_call_operand.hbm [shape: f32[12,64], index: 2, kind: input, shape index: {}]   ;;  %s4398_s3 = inlined_call_operand.hbm [shape: f32[12,64], index: 3, kind: input, shape index: {}]   ;;  %s4399_s4 = inlined_call_operand.vmem [shape: f32[64,64], index: 4, kind: input, shape index: {}]   ;;  %s4400_s5 = inlined_call_operand.hbm [shape: f32[64,64], index: 5, kind: input, shape index: {}]   ;;  %s4401_s6 = inlined_call_operand.hbm [shape: f32[64,64], index: 6, kind: input, shape index: {}]   ;;  %s4402_s7 = inlined_call_operand.vmem [shape: f32[1,64], index: 7, kind: input, shape index: {}]   ;;  %s4403_s8 = inlined_call_operand.vmem [shape: f32[1,64], index: 8, kind: input, shape index: {}]   ;;  %s4404_s9 = inlined_call_operand.vmem [shape: f32[1,64], index: 9, kind: input, shape index: {}]   ;;  %s4405_s10 = inlined_call_operand.vmem [shape: f32[1,64], index: 10, kind: input, shape index: {}]   ;;  %s4406_s11 = inlined_call_operand.vmem [shape: f32[64,1], index: 11, kind: input, shape index: {}]   ;;  %s4407_s12 = inlined_call_operand.<no memory space> [shape: f32[1,1], index: 12, kind: input, shape index: {}]   ;;  %s4408_s13 = inlined_call_operand.vmem [shape: f32[2,1], index: 13, kind: output, shape index: {}]  }
   0x1   :  { %v18_v0 = vstv %s4407_s12 }
   0x2   :  { %19 = vst [vmem:[#allocation2] sm:$0x1] %v18_v0 }
   0x3   :  { %20 = vsyncpa [#allocation4], 0 }
   0x4   :  { %21 = vsyncpa [#allocation6], 0 }
   0x5   :  { %22 = vsyncpa [#allocation9], 0  ;;  %s3790_s27 = smov [#allocation5]   ;;  %s3791_s29 = smov [#allocation8]  }
   0x6   :  { %s42_s28 = sshll.u32 %s3790_s27, 4  ;;  %s68_s30 = sshll.u32 %s3791_s29, 4  ;;  %s43_s28 = int_to_ptr.vmem [resolvable:$true] %s42_s28  ;;  %s3874_s30 = int_to_ptr.vmem [resolvable:$true] %s68_s30 }
   0x7   :  { %s3674_s16 = scalar_lea.hbm %s4397_s2, 256 }
   0x8   :  { %p3675_p0 = scmp.ne.s32.totalorder %s4397_s2, %s3674_s16  ;;  %p3678_p1 = scmp.lt.u32.totalorder %s3674_s16, %s4397_s2 }
   0xa   :  { %p3680_p2 = pnand %p3678_p1, %p3675_p0 }
   0xc   :  { %3683 = shalt.err (!%p3680_p2)
}
   0xd   :  { %s3684_s20 = scalar_lea.vmem %s43_s28, 256  ;;  %p3689_p4 = scmp.lt.s32.totalorder %s43_s28, %s43_s28 }
   0xe   :  { %p3685_p3 = scmp.ne.s32.totalorder %s43_s28, %s3684_s20  ;;  %p3690_p5 = scmp.lt.s32.totalorder %s3684_s20, %s3684_s20 }
  0x10   :  { %p3691_p6 = por %p3690_p5, %p3689_p4 }
  0x12   :  { %p3692_p7 = pnand %p3691_p6, %p3685_p3 }
  0x14   :  { %3695 = shalt.err (!%p3692_p7)
}
  0x15   :  { %s3792_s21 = smov 128   ;;  %s3793_s22 = smov 8  }
  0x16   :  { %48 = dma.hbm_to_vmem [thread:$0]  %s4397_s2, 256, %s43_s28, [#allocation6], %s3792_s21, %s3792_s21, %s3793_s22  }
  0x17   :  { %s3696_s27 = scalar_lea.hbm %s4400_s5, 1024 }
  0x18   :  { %p3697_p8 = scmp.ne.s32.totalorder %s4400_s5, %s3696_s27  ;;  %p3700_p9 = scmp.lt.u32.totalorder %s3696_s27, %s4400_s5 }
  0x1a   :  { %p3702_p10 = pnand %p3700_p9, %p3697_p8 }
  0x1c   :  { %3705 = shalt.err (!%p3702_p10)
}
  0x1d   :  { %s3706_s17 = scalar_lea.vmem %s3874_s30, 1024  ;;  %p3711_p12 = scmp.lt.s32.totalorder %s3874_s30, %s3874_s30 }
  0x1e   :  { %p3707_p11 = scmp.ne.s32.totalorder %s3874_s30, %s3706_s17  ;;  %p3712_p13 = scmp.lt.s32.totalorder %s3706_s17, %s3706_s17 }
  0x20   :  { %p3713_p0 = por %p3712_p13, %p3711_p12 }
  0x22   :  { %p3714_p1 = pnand %p3713_p0, %p3707_p11 }
  0x24   :  { %3717 = shalt.err (!%p3714_p1)
}
  0x25   :  { %74 = dma.hbm_to_vmem [thread:$0]  %s4400_s5, 1024, %s3874_s30, [#allocation9], %s3792_s21, %s3792_s21, %s3793_s22  }
  0x26   :  { %s3794_s18 = smov [#allocation3]   ;;  %s3795_s19 = smov [#allocation7]  }
  0x27   :  { %s30_s12 = sshll.u32 %s3794_s18, 4  ;;  %s54_s20 = sshll.u32 %s3795_s19, 4  ;;  %s31_s12 = int_to_ptr.vmem [resolvable:$true] %s30_s12  ;;  %s3911_s20 = int_to_ptr.vmem [resolvable:$true] %s54_s20 }
  0x28   :  { %s3718_s25 = scalar_lea.hbm %s4396_s1, 256 }
  0x29   :  { %p3719_p2 = scmp.ne.s32.totalorder %s4396_s1, %s3718_s25  ;;  %p3722_p3 = scmp.lt.u32.totalorder %s3718_s25, %s4396_s1 }
  0x2b   :  { %p3724_p4 = pnand %p3722_p3, %p3719_p2 }
  0x2d   :  { %3727 = shalt.err (!%p3724_p4)
}
  0x2e   :  { %s3728_s5 = scalar_lea.vmem %s31_s12, 256  ;;  %p3733_p6 = scmp.lt.s32.totalorder %s31_s12, %s31_s12 }
  0x2f   :  { %p3729_p5 = scmp.ne.s32.totalorder %s31_s12, %s3728_s5  ;;  %p3734_p7 = scmp.lt.s32.totalorder %s3728_s5, %s3728_s5 }
  0x31   :  { %p3735_p8 = por %p3734_p7, %p3733_p6 }
  0x33   :  { %p3736_p9 = pnand %p3735_p8, %p3729_p5 }
  0x35   :  { %3739 = shalt.err (!%p3736_p9)
}
  0x36   :  { %36 = dma.hbm_to_vmem [thread:$0]  %s4396_s1, 256, %s31_s12, [#allocation4], %s3792_s21, %s3792_s21, %s3793_s22  }
  0x37   :  { %s3740_s2 = scalar_lea.hbm %s4398_s3, 256 }
  0x38   :  { %p3741_p10 = scmp.ne.s32.totalorder %s4398_s3, %s3740_s2  ;;  %p3744_p11 = scmp.lt.u32.totalorder %s3740_s2, %s4398_s3 }
  0x3a   :  { %p3746_p12 = pnand %p3744_p11, %p3741_p10 }
  0x3c   :  { %3749 = shalt.err (!%p3746_p12)
}
  0x3d   :  { %s3750_s24 = scalar_lea.vmem %s3911_s20, 256  ;;  %p3755_p0 = scmp.lt.s32.totalorder %s3911_s20, %s3911_s20 }
  0x3e   :  { %p3751_p13 = scmp.ne.s32.totalorder %s3911_s20, %s3750_s24  ;;  %p3756_p1 = scmp.lt.s32.totalorder %s3750_s24, %s3750_s24 }
  0x40   :  { %p3757_p2 = por %p3756_p1, %p3755_p0 }
  0x42   :  { %p3758_p3 = pnand %p3757_p2, %p3751_p13 }
  0x44   :  { %3761 = shalt.err (!%p3758_p3)
}
  0x45   :  { %60 = dma.hbm_to_vmem [thread:$0]  %s4398_s3, 256, %s3911_s20, [#allocation6], %s3792_s21, %s3792_s21, %s3793_s22  }
  0x46   :  { %s3796_s25 = smov [#allocation10]   ;;  %s3762_s14 = scalar_lea.hbm %s4401_s6, 1024 }
  0x47   :  { %s80_s26 = sshll.u32 %s3796_s25, 4  ;;  %p3763_p4 = scmp.ne.s32.totalorder %s4401_s6, %s3762_s14  ;;  %s81_s26 = int_to_ptr.vmem [resolvable:$true] %s80_s26 }
  0x48   :  { %p3766_p5 = scmp.lt.u32.totalorder %s3762_s14, %s4401_s6 }
  0x4a   :  { %p3768_p6 = pnand %p3766_p5, %p3763_p4 }
  0x4c   :  { %3771 = shalt.err (!%p3768_p6)
}
  0x4d   :  { %s3772_s17 = scalar_lea.vmem %s81_s26, 1024  ;;  %p3777_p8 = scmp.lt.s32.totalorder %s81_s26, %s81_s26 }
  0x4e   :  { %p3773_p7 = scmp.ne.s32.totalorder %s81_s26, %s3772_s17  ;;  %p3778_p9 = scmp.lt.s32.totalorder %s3772_s17, %s3772_s17 }
  0x50   :  { %p3779_p10 = por %p3778_p9, %p3777_p8 }
  0x52   :  { %p3780_p11 = pnand %p3779_p10, %p3773_p7 }
  0x54   :  { %3783 = shalt.err (!%p3780_p11)
}
  0x55   :  { %86 = dma.hbm_to_vmem [thread:$0]  %s4401_s6, 1024, %s81_s26, [#allocation9], %s3792_s21, %s3792_s21, %s3793_s22  }
  0x56   :  { %3784 = dma.done.wait [#allocation4], 256  }
  0x57   :  { %3785 = vsyncadd [#allocation4], 4294967040 }
  0x58   :  { %3786 = dma.done.wait [#allocation6], 512  }
  0x59   :  { %3787 = vsyncadd [#allocation6], 4294966784 }
  0x5a   :  { %3788 = dma.done.wait [#allocation9], 2048  }
  0x5b   :  { %3789 = vsyncadd [#allocation9], 4294965248  ;;  %v3797_v1 = vmov 0.0|0.0   ;;  %vm3798_vm0 = vmmov 0   ;;  %v3799_v2 = vmov 0.0   ;;  %vm132_vm1 = vcmask 1043456  }
  0x5c   :  { %3283 = vmatprep.subr.bf16.mxu1 %v3797_v1  ;;  %2806 = vmatprep.mubr.msk.f32.mxu1 %vm3798_vm0, %v3799_v2  ;;  %vm3800_vm2 = vmmov 1   ;;  %vm125_vm4 = vcmask 97280   ;;  %v116_v4 = vld [vmem:[#allocation3] sm:$0xff]  ;;  %v117_v5 = vld [vmem:[#allocation3 + $0x8] sm:$0xf]  ;;  %v211_v10 = vld [vmem:[#allocation5] sm:$0xff] }
  0x5d   :  { %vm3966_vm3 = vmpackc.low %vm132_vm1, %vm3800_vm2  ;;  %v385_v6 = vld [vmem:[%s4399_s4] sm:$0xff]  ;;  %v3265_v7 = vpack.c.bf16 %v117_v5, %v116_v4  ;;  %v386_v8 = vld [vmem:[%s4399_s4 + $0x8] sm:$0xff]  ;;  %vm410_vm5 = vcmask 523264   ;;  %vm2471_vm6 = vcmask 1024  }
  0x5e   :  { %v114_v9 = vld [vmem:[%s4395_s0] sm:$0xff]  ;;  %v3979_v11 = vpack.c.bf16 %v386_v8, %v385_v6  ;;  %v212_v12 = vld [vmem:[#allocation5 + $0x8] sm:$0xf]  ;;  %v387_v13 = vld [vmem:[%s4399_s4 + $0x10] sm:$0xff] }
  0x5f   :  { %2773 = vmatprep.mubr.msk.f32.mxu0 %vm125_vm4, %v114_v9  ;;  %v388_v14 = vld [vmem:[%s4399_s4 + $0x18] sm:$0xff]  ;;  %3267 = vmatprep.subr.msk.bf16.mxu0 %vm3966_vm3, %v3265_v7  ;;  %v3271_v15 = vpack.c.bf16 %v212_v12, %v211_v10  ;;  %v298_v16 = vld [vmem:[#allocation7] sm:$0xff]  ;;  %v299_v17 = vld [vmem:[#allocation7 + $0x8] sm:$0xf] }
  0x60   :  { %3285 = vmatpush3.bf16.msra.mxu1 %v3979_v11  ;;  %3270 = vmatpush3.bf16.msk.msra.mxu0 %vm3966_vm3, %v3265_v7  ;;  %v3993_v18 = vpack.c.bf16 %v388_v14, %v387_v13  ;;  %v115_v19 = vld [vmem:[%s4395_s0 + $0x8] sm:$0xff]  ;;  %v389_v20 = vld [vmem:[%s4399_s4 + $0x20] sm:$0xff]  ;;  %v3277_v22 = vpack.c.bf16 %v299_v17, %v298_v16  ;;  %v391_v24 = vld [vmem:[%s4399_s4 + $0x30] sm:$0xff] }
  0x61   :  { %3286 = vmatprep.subr.bf16.mxu1 %v3797_v1  ;;  %3273 = vmatprep.subr.msk.bf16.mxu0 %vm3966_vm3, %v3271_v15  ;;  %v390_v21 = vld [vmem:[%s4399_s4 + $0x28] sm:$0xff]  ;;  %v392_v25 = vld [vmem:[%s4399_s4 + $0x38] sm:$0xff]  ;;  %v2480_v51 = vld [vmem:[%s4402_s7] ss:$0 sm:$0xff] }
  0x62   :  { %v4011_v23 = vpack.c.bf16 %v390_v21, %v389_v20  ;;  %v393_v26 = vld [vmem:[#allocation8] sm:$0xff]  ;;  %v394_v27 = vld [vmem:[#allocation8 + $0x8] sm:$0xff]  ;;  %v4027_v28 = vpack.c.bf16 %v392_v25, %v391_v24  ;;  %v395_v30 = vld [vmem:[#allocation8 + $0x10] sm:$0xff] }
  0x63   :  { %2774 = vmatmul.mubr.msk.f32.vlgmr.msra.gmra.mrb[0].mxu0 %vm125_vm4, %v115_v19  ;;  %v4029_v29 = vpack.c.bf16 %v394_v27, %v393_v26  ;;  %v396_v31 = vld [vmem:[#allocation8 + $0x18] sm:$0xff]  ;;  %v401_v32 = vld [vmem:[#allocation10] sm:$0xff]  ;;  %v402_v33 = vld [vmem:[#allocation10 + $0x8] sm:$0xff] }
  0x64   :  { %3288 = vmatpush3.bf16.msra.mxu1 %v3993_v18  ;;  %3276 = vmatpush3.bf16.msk.msra.mxu0 %vm3966_vm3, %v3271_v15  ;;  %v4037_v34 = vpack.c.bf16 %v396_v31, %v395_v30  ;;  %v397_v35 = vld [vmem:[#allocation8 + $0x20] sm:$0xff]  ;;  %v4039_v36 = vpack.c.bf16 %v402_v33, %v401_v32  ;;  %v398_v37 = vld [vmem:[#allocation8 + $0x28] sm:$0xff]  ;;  %v403_v38 = vld [vmem:[#allocation10 + $0x10] sm:$0xff] }
  0x65   :  { %3289 = vmatprep.subr.bf16.mxu1 %v3797_v1  ;;  %2780 = vmatprep.mubr.msk.f32.mxu0 %vm125_vm4, %v114_v9  ;;  %v404_v39 = vld [vmem:[#allocation10 + $0x18] sm:$0xff]  ;;  %v4047_v40 = vpack.c.bf16 %v398_v37, %v397_v35  ;;  %v399_v41 = vld [vmem:[#allocation8 + $0x30] sm:$0xff]  ;;  %v405_v44 = vld [vmem:[#allocation10 + $0x20] sm:$0xff] }
  0x66   :  { %3279 = vmatprep.subr.msk.bf16.mxu0 %vm3966_vm3, %v3277_v22  ;;  %v4050_v42 = vpack.c.bf16 %v404_v39, %v403_v38  ;;  %v400_v43 = vld [vmem:[#allocation8 + $0x38] sm:$0xff]  ;;  %v406_v45 = vld [vmem:[#allocation10 + $0x28] sm:$0xff]  ;;  %v407_v48 = vld [vmem:[#allocation10 + $0x30] sm:$0xff] }
  0x67   :  { %2781 = vmatmul.mubr.msk.f32.vlgmr.msra.gmra.mrb[2].mxu0 %vm125_vm4, %v115_v19  ;;  %v4057_v46 = vpack.c.bf16 %v400_v43, %v399_v41  ;;  %v4060_v47 = vpack.c.bf16 %v406_v45, %v405_v44  ;;  %v408_v49 = vld [vmem:[#allocation10 + $0x38] sm:$0xff]  ;;  %v2484_v55 = vld [vmem:[%s4403_s8] ss:$0 sm:$0xff] }
  0x68   :  { %3291 = vmatpush3.bf16.msra.mxu1 %v4011_v23  ;;  %3282 = vmatpush3.bf16.msk.msra.mxu0 %vm3966_vm3, %v3277_v22  ;;  %v4066_v50 = vpack.c.bf16 %v408_v49, %v407_v48  ;;  %v2488_v59 = vld [vmem:[%s4404_s9] ss:$0 sm:$0xff] }
  0x69   :  { %3292 = vmatprep.subr.bf16.mxu1 %v3797_v1  ;;  %2787 = vmatprep.mubr.msk.f32.mxu0 %vm125_vm4, %v114_v9  ;;  %v4118_v16 = vld [vmem:[%s4405_s10] ss:$0 sm:$0xff] }
  0x6a   :  { %3295 = vmatprep.subr.bf16.mxu0 %v3797_v1 }
  0x6b   :  { %2788 = vmatmul.mubr.msk.f32.vlgmr.msra.gmra.mrb[4].mxu0 %vm125_vm4, %v115_v19 }
  0x6c   :  { %3294 = vmatpush3.bf16.msra.mxu1 %v4027_v28  ;;  %3297 = vmatpush3.bf16.msra.mxu0 %v4029_v29 }
  0x6d   :  { %3298 = vmatprep.subr.bf16.mxu0 %v3797_v1  ;;  %3307 = vmatprep.subr.bf16.mxu1 %v3797_v1 }
  0x6e   :  { %2825 = vmatprep.mubr.msk.f32.mxu0 %vm3798_vm0, %v3799_v2 }
  0x6f   :  { %2807 = vmatmul.mubr.f32.vlgmr.msra.gmra.mrb[0].mxu1 %v3799_v2 }
  0x70   :  { %3300 = vmatpush3.bf16.msra.mxu0 %v4037_v34  ;;  %3309 = vmatpush3.bf16.msra.mxu1 %v4039_v36 }
  0x71   :  { %3301 = vmatprep.subr.bf16.mxu0 %v3797_v1  ;;  %3310 = vmatprep.subr.bf16.mxu1 %v3797_v1 }
  0x72   :  { %2844 = vmatprep.mubr.msk.f32.mxu1 %vm3798_vm0, %v3799_v2 }
  0x74   :  { %3303 = vmatpush3.bf16.msra.mxu0 %v4047_v40  ;;  %3312 = vmatpush3.bf16.msra.mxu1 %v4050_v42 }
  0x75   :  { %3304 = vmatprep.subr.bf16.mxu0 %v3797_v1  ;;  %3313 = vmatprep.subr.bf16.mxu1 %v3797_v1 }
  0x78   :  { %3306 = vmatpush3.bf16.msra.mxu0 %v4057_v46  ;;  %3315 = vmatpush3.bf16.msra.mxu1 %v4060_v47 }
  0x79   :  { %3316 = vmatprep.subr.bf16.mxu1 %v3797_v1  ;;  %3319 = vmatprep.subr.bf16.mxu0 %v3797_v1 }
  0x7b   :  { %2826 = vmatmul.mubr.f32.vlgmr.msra.gmra.mrb[6].mxu0 %v3799_v2 }
  0x7c   :  { %3318 = vmatpush3.bf16.msra.mxu1 %v4066_v50  ;;  %3321 = vmatpush3.bf16.msra.mxu0 %v3979_v11 }
  0x7d   :  { %3331 = vmatprep.subr.bf16.mxu1 %v3797_v1  ;;  %3322 = vmatprep.subr.bf16.mxu0 %v3797_v1 }
  0x7e   :  { %2863 = vmatprep.mubr.msk.f32.mxu0 %vm3798_vm0, %v3799_v2 }
  0x7f   :  { %2845 = vmatmul.mubr.f32.vlgmr.msra.gmra.mrb[2].mxu1 %v3799_v2 }
  0x80   :  { %3333 = vmatpush3.bf16.msra.mxu1 %v4029_v29  ;;  %3324 = vmatpush3.bf16.msra.mxu0 %v3993_v18 }
  0x81   :  { %3334 = vmatprep.subr.bf16.mxu1 %v3797_v1  ;;  %3325 = vmatprep.subr.bf16.mxu0 %v3797_v1 }
  0x82   :  { %2882 = vmatprep.mubr.msk.f32.mxu1 %vm3798_vm0, %v3799_v2 }
  0x84   :  { %3336 = vmatpush3.bf16.msra.mxu1 %v4037_v34  ;;  %3327 = vmatpush3.bf16.msra.mxu0 %v4011_v23 }
  0x85   :  { %3337 = vmatprep.subr.bf16.mxu1 %v3797_v1  ;;  %3328 = vmatprep.subr.bf16.mxu0 %v3797_v1 }
  0x88   :  { %3339 = vmatpush3.bf16.msra.mxu1 %v4047_v40  ;;  %3330 = vmatpush3.bf16.msra.mxu0 %v4027_v28 }
  0x89   :  { %3340 = vmatprep.subr.bf16.mxu1 %v3797_v1  ;;  %3343 = vmatprep.subr.bf16.mxu0 %v3797_v1 }
  0x8c   :  { %3342 = vmatpush3.bf16.msra.mxu1 %v4057_v46 }
  0x8d   :  { %3355 = vmatprep.subr.bf16.mxu1 %v3797_v1 }
 0x136   :  { %v2775_v52 = vpop.f32.mrb[0].mxu0 }
 0x137   :  { %v4097_v53 = vadd.f32 %v2775_v52, %v2480_v51  ;;  %v202_v54 = vpop.f32.mrb[1].mxu0 }
 0x138   :  { %v4109_v63 = vadd.f32 %v2480_v51, %v202_v54 }
 0x13a   :  { %v2782_v56 = vpop.f32.mrb[2].mxu0 }
 0x13b   :  { %v4102_v57 = vadd.f32 %v2782_v56, %v2484_v55  ;;  %v289_v58 = vpop.f32.mrb[3].mxu0 }
 0x13c   :  { %v4112_v6 = vadd.f32 %v2484_v55, %v289_v58 }
 0x13e   :  { %v2789_v60 = vpop.f32.mrb[4].mxu0 }
 0x13f   :  { %v4107_v61 = vadd.f32 %v2789_v60, %v2488_v59  ;;  %v376_v62 = vpop.f32.mrb[5].mxu0 }
 0x140   :  { %v4121_v21 = vadd.f32 %v2488_v59, %v376_v62 }
 0x142   :  { %v480_v0 = vpop.f32.mrb[0].mxu1 }
 0x143   :  { %v630_v3 = vadd.f32 %v480_v0, %v4109_v63  ;;  %v2808_v4 = vpop.f32.mrb[1].mxu1 }
 0x145   :  { %v2493_v5 = vmul.f32 -1.442695, %v630_v3 }
 0x147   :  { %3594 = vpow2.f32 %v2493_v5 }
 0x14e   :  { %v550_v7 = vpop.f32.mrb[6].mxu0 }
 0x14f   :  { %v637_v8 = vadd.f32 %v550_v7, %v4112_v6  ;;  %v2827_v9 = vpop.f32.mrb[7].mxu0 }
 0x151   :  { %v3595_v10 = vpop.eup %3594  ;;  %v2494_v12 = vmul.f32 -1.442695, %v637_v8 }
 0x152   :  { %v634_v13 = vadd.f32 1.0, %v3595_v10  ;;  %v626_v14 = vpop.f32.mrb[2].mxu1 }
 0x153   :  { %3596 = vpow2.f32 %v2494_v12  ;;  %v2846_v15 = vpop.f32.mrb[3].mxu1  ;;  %v627_v17 = vadd.f32 %v4118_v16, %v626_v14 }
 0x154   :  { %3598 = vrcp.f32 %v634_v13 }
 0x15d   :  { %v3597_v19 = vpop.eup %3596 }
 0x15e   :  { %v3599_v20 = vpop.eup %3598  ;;  %v641_v24 = vadd.f32 1.0, %v3597_v19 }
 0x15f   :  { %v644_v22 = vmul.f32 %v3599_v20, %v627_v17 }
 0x161   :  { %v645_v25 = vadd.f32 %v644_v22, %v4121_v21 }
 0x163   :  { %3600 = vtanh.f32 %v645_v25 }
 0x164   :  { %3602 = vrcp.f32 %v641_v24 }
 0x16d   :  { %v3601_v26 = vpop.eup %3600 }
 0x16e   :  { %v647_v27 = vsub.f32 0.0, %v3601_v26  ;;  %v3603_v30 = vpop.eup %3602 }
 0x170   :  { %v648_v31 = vmul.f32 %v3603_v30, %v647_v27 }
 0x172   :  { %v649_v32 = vadd.f32 %v3601_v26, %v648_v31 }
 0x174   :  { %2864 = vmatmul.mubr.msk.f32.vlgmr.msra.gmra.mrb[8].mxu0 %vm410_vm5, %v649_v32  ;;  %2883 = vmatmul.mubr.msk.f32.vlgmr.msra.gmra.mrb[4].mxu1 %vm410_vm5, %v649_v32 }
 0x175   :  { %3345 = vmatpush3.bf16.msra.mxu0 %v4039_v36  ;;  %2901 = vmatprep.mubr.msk.f32.mxu0 %vm3798_vm0, %v3799_v2 }
 0x176   :  { %3346 = vmatprep.subr.bf16.mxu0 %v3797_v1  ;;  %3357 = vmatpush3.bf16.msra.mxu1 %v3979_v11 }
 0x177   :  { %3358 = vmatprep.subr.bf16.mxu1 %v3797_v1  ;;  %2920 = vmatprep.mubr.msk.f32.mxu1 %vm3798_vm0, %v3799_v2 }
 0x179   :  { %3348 = vmatpush3.bf16.msra.mxu0 %v4050_v42 }
 0x17a   :  { %3349 = vmatprep.subr.bf16.mxu0 %v3797_v1  ;;  %3360 = vmatpush3.bf16.msra.mxu1 %v3993_v18 }
 0x17b   :  { %3361 = vmatprep.subr.bf16.mxu1 %v3797_v1 }
 0x17d   :  { %3351 = vmatpush3.bf16.msra.mxu0 %v4060_v47 }
 0x17e   :  { %3352 = vmatprep.subr.bf16.mxu0 %v3797_v1  ;;  %3363 = vmatpush3.bf16.msra.mxu1 %v4011_v23 }
 0x17f   :  { %3364 = vmatprep.subr.bf16.mxu1 %v3797_v1 }
 0x181   :  { %3354 = vmatpush3.bf16.msra.mxu0 %v4066_v50 }
 0x182   :  { %3367 = vmatprep.subr.bf16.mxu0 %v3797_v1  ;;  %3366 = vmatpush3.bf16.msra.mxu1 %v4027_v28 }
 0x183   :  { %3379 = vmatprep.subr.bf16.mxu1 %v3797_v1 }
 0x184   :  { %2902 = vmatmul.mubr.msk.f32.vlgmr.msra.gmra.mrb[10].mxu0 %vm410_vm5, %v649_v32 }
 0x185   :  { %3369 = vmatpush3.bf16.msra.mxu0 %v4029_v29  ;;  %2939 = vmatprep.mubr.msk.f32.mxu0 %vm3798_vm0, %v3799_v2 }
 0x186   :  { %3370 = vmatprep.subr.bf16.mxu0 %v3797_v1 }
 0x189   :  { %3372 = vmatpush3.bf16.msra.mxu0 %v4037_v34 }
 0x18a   :  { %3373 = vmatprep.subr.bf16.mxu0 %v3797_v1 }
 0x18d   :  { %3375 = vmatpush3.bf16.msra.mxu0 %v4047_v40 }
 0x18e   :  { %3376 = vmatprep.subr.bf16.mxu0 %v3797_v1 }
 0x191   :  { %3378 = vmatpush3.bf16.msra.mxu0 %v4057_v46 }
 0x192   :  { %3391 = vmatprep.subr.bf16.mxu0 %v3797_v1 }
 0x247   :  { %v719_v33 = vpop.f32.mrb[8].mxu0  ;;  %v789_v35 = vpop.f32.mrb[4].mxu1 }
 0x248   :  { %v864_v37 = vrot.slane %v719_v33, 6  ;;  %v2865_v38 = vpop.f32.mrb[9].mxu0  ;;  %v2884_v39 = vpop.f32.mrb[5].mxu1  ;;  %v874_v44 = vrot.slane %v789_v35, 6 }
 0x24a   :  { %v866_v41 = vadd.f32 %v864_v37, %v4109_v63  ;;  %v876_v45 = vadd.f32 %v874_v44, %v4112_v6 }
 0x24c   :  { %v2498_v43 = vmul.f32 -1.442695, %v866_v41  ;;  %v2499_v54 = vmul.f32 -1.442695, %v876_v45 }
 0x24e   :  { %3604 = vpow2.f32 %v2498_v43 }
 0x257   :  { %v859_v48 = vpop.f32.mrb[10].mxu0 }
 0x258   :  { %v3605_v49 = vpop.eup %3604  ;;  %v2903_v51 = vpop.f32.mrb[11].mxu0  ;;  %v860_v55 = vadd.f32 %v4118_v16, %v859_v48 }
 0x259   :  { %v870_v52 = vadd.f32 1.0, %v3605_v49 }
 0x25a   :  { %v884_v56 = vrot.slane %v860_v55, 6 }
 0x25b   :  { %3606 = vrcp.f32 %v870_v52 }
 0x25c   :  { %3608 = vpow2.f32 %v2499_v54 }
 0x265   :  { %v3607_v58 = vpop.eup %3606 }
 0x266   :  { %v886_v59 = vmul.f32 %v3607_v58, %v884_v56  ;;  %v3609_v62 = vpop.eup %3608 }
 0x267   :  { %v880_v0 = vadd.f32 1.0, %v3609_v62 }
 0x268   :  { %v887_v60 = vadd.f32 %v886_v59, %v4121_v21 }
 0x26a   :  { %3610 = vtanh.f32 %v887_v60 }
 0x26b   :  { %3612 = vrcp.f32 %v880_v0 }
 0x274   :  { %v3611_v3 = vpop.eup %3610 }
 0x275   :  { %v890_v4 = vrot.slane %v3611_v3, 2  ;;  %v3613_v8 = vpop.eup %3612 }
 0x277   :  { %v892_v5 = vsub.f32 %v649_v32, %v890_v4 }
 0x279   :  { %v894_v7 = vrot.slane %v892_v5, 6 }
 0x27b   :  { %v896_v9 = vmul.f32 %v3613_v8, %v894_v7 }
 0x27d   :  { %v897_v10 = vadd.f32 %v3611_v3, %v896_v9 }
 0x27f   :  { %v899_v12 = vrot.slane %v897_v10, 2 }
 0x281   :  { %2921 = vmatmul.mubr.msk.f32.vlgmr.msra.gmra.mrb[6].mxu1 %vm410_vm5, %v899_v12  ;;  %2940 = vmatmul.mubr.msk.f32.vlgmr.msra.gmra.mrb[12].mxu0 %vm410_vm5, %v899_v12 }
 0x282   :  { %3381 = vmatpush3.bf16.msra.mxu1 %v4039_v36  ;;  %2958 = vmatprep.mubr.msk.f32.mxu1 %vm3798_vm0, %v3799_v2 }
 0x283   :  { %3382 = vmatprep.subr.bf16.mxu1 %v3797_v1  ;;  %3393 = vmatpush3.bf16.msra.mxu0 %v3979_v11 }
 0x284   :  { %3394 = vmatprep.subr.bf16.mxu0 %v3797_v1  ;;  %2977 = vmatprep.mubr.msk.f32.mxu0 %vm3798_vm0, %v3799_v2 }
 0x286   :  { %3384 = vmatpush3.bf16.msra.mxu1 %v4050_v42 }
 0x287   :  { %3385 = vmatprep.subr.bf16.mxu1 %v3797_v1  ;;  %3396 = vmatpush3.bf16.msra.mxu0 %v3993_v18 }
 0x288   :  { %3397 = vmatprep.subr.bf16.mxu0 %v3797_v1 }
 0x28a   :  { %3387 = vmatpush3.bf16.msra.mxu1 %v4060_v47 }
 0x28b   :  { %3388 = vmatprep.subr.bf16.mxu1 %v3797_v1  ;;  %3399 = vmatpush3.bf16.msra.mxu0 %v4011_v23 }
 0x28c   :  { %3400 = vmatprep.subr.bf16.mxu0 %v3797_v1 }
 0x28e   :  { %3390 = vmatpush3.bf16.msra.mxu1 %v4066_v50 }
 0x28f   :  { %3403 = vmatprep.subr.bf16.mxu1 %v3797_v1  ;;  %3402 = vmatpush3.bf16.msra.mxu0 %v4027_v28 }
 0x290   :  { %3415 = vmatprep.subr.bf16.mxu0 %v3797_v1 }
 0x291   :  { %2959 = vmatmul.mubr.msk.f32.vlgmr.msra.gmra.mrb[8].mxu1 %vm410_vm5, %v899_v12 }
 0x292   :  { %3405 = vmatpush3.bf16.msra.mxu1 %v4029_v29  ;;  %2996 = vmatprep.mubr.msk.f32.mxu1 %vm3798_vm0, %v3799_v2 }
 0x293   :  { %3406 = vmatprep.subr.bf16.mxu1 %v3797_v1 }
 0x296   :  { %3408 = vmatpush3.bf16.msra.mxu1 %v4037_v34 }
 0x297   :  { %3409 = vmatprep.subr.bf16.mxu1 %v3797_v1 }
 0x29a   :  { %3411 = vmatpush3.bf16.msra.mxu1 %v4047_v40 }
 0x29b   :  { %3412 = vmatprep.subr.bf16.mxu1 %v3797_v1 }
 0x29e   :  { %3414 = vmatpush3.bf16.msra.mxu1 %v4057_v46 }
 0x29f   :  { %3427 = vmatprep.subr.bf16.mxu1 %v3797_v1 }
 0x354   :  { %v968_v13 = vpop.f32.mrb[6].mxu1  ;;  %v1038_v14 = vpop.f32.mrb[12].mxu0 }
 0x355   :  { %v1113_v15 = vrot.slane %v968_v13, 4  ;;  %v2922_v17 = vpop.f32.mrb[7].mxu1  ;;  %v2941_v19 = vpop.f32.mrb[13].mxu0  ;;  %v1123_v24 = vrot.slane %v1038_v14, 4 }
 0x357   :  { %v1115_v20 = vadd.f32 %v1113_v15, %v4109_v63  ;;  %v1125_v25 = vadd.f32 %v1123_v24, %v4112_v6 }
 0x359   :  { %v2503_v22 = vmul.f32 -1.442695, %v1115_v20  ;;  %v2504_v32 = vmul.f32 -1.442695, %v1125_v25 }
 0x35b   :  { %3614 = vpow2.f32 %v2503_v22 }
 0x364   :  { %v1108_v26 = vpop.f32.mrb[8].mxu1 }
 0x365   :  { %v3615_v27 = vpop.eup %3614  ;;  %v2960_v30 = vpop.f32.mrb[9].mxu1  ;;  %v1109_v33 = vadd.f32 %v4118_v16, %v1108_v26 }
 0x366   :  { %v1119_v31 = vadd.f32 1.0, %v3615_v27 }
 0x367   :  { %v1133_v35 = vrot.slane %v1109_v33, 4 }
 0x368   :  { %3616 = vrcp.f32 %v1119_v31 }
 0x369   :  { %3618 = vpow2.f32 %v2504_v32 }
 0x372   :  { %v3617_v37 = vpop.eup %3616 }
 0x373   :  { %v1135_v38 = vmul.f32 %v3617_v37, %v1133_v35  ;;  %v3619_v41 = vpop.eup %3618 }
 0x374   :  { %v1129_v43 = vadd.f32 1.0, %v3619_v41 }
 0x375   :  { %v1136_v39 = vadd.f32 %v1135_v38, %v4121_v21 }
 0x377   :  { %3620 = vtanh.f32 %v1136_v39 }
 0x378   :  { %3622 = vrcp.f32 %v1129_v43 }
 0x381   :  { %v3621_v44 = vpop.eup %3620 }
 0x382   :  { %v1139_v45 = vrot.slane %v3621_v44, 2  ;;  %v3623_v51 = vpop.eup %3622 }
 0x384   :  { %v1141_v48 = vsub.f32 %v897_v10, %v1139_v45 }
 0x386   :  { %v1143_v49 = vrot.slane %v1141_v48, 6 }
 0x388   :  { %v1145_v52 = vmul.f32 %v3623_v51, %v1143_v49 }
 0x38a   :  { %v1146_v54 = vadd.f32 %v3621_v44, %v1145_v52 }
 0x38c   :  { %v1148_v55 = vrot.slane %v1146_v54, 4 }
 0x38e   :  { %2978 = vmatmul.mubr.msk.f32.vlgmr.msra.gmra.mrb[14].mxu0 %vm410_vm5, %v1148_v55  ;;  %2997 = vmatmul.mubr.msk.f32.vlgmr.msra.gmra.mrb[10].mxu1 %vm410_vm5, %v1148_v55 }
 0x38f   :  { %3417 = vmatpush3.bf16.msra.mxu0 %v4039_v36  ;;  %3015 = vmatprep.mubr.msk.f32.mxu0 %vm3798_vm0, %v3799_v2 }
 0x390   :  { %3418 = vmatprep.subr.bf16.mxu0 %v3797_v1  ;;  %3429 = vmatpush3.bf16.msra.mxu1 %v3979_v11 }
 0x391   :  { %3430 = vmatprep.subr.bf16.mxu1 %v3797_v1  ;;  %3034 = vmatprep.mubr.msk.f32.mxu1 %vm3798_vm0, %v3799_v2 }
 0x393   :  { %3420 = vmatpush3.bf16.msra.mxu0 %v4050_v42 }
 0x394   :  { %3421 = vmatprep.subr.bf16.mxu0 %v3797_v1  ;;  %3432 = vmatpush3.bf16.msra.mxu1 %v3993_v18 }
 0x395   :  { %3433 = vmatprep.subr.bf16.mxu1 %v3797_v1 }
 0x397   :  { %3423 = vmatpush3.bf16.msra.mxu0 %v4060_v47 }
 0x398   :  { %3424 = vmatprep.subr.bf16.mxu0 %v3797_v1  ;;  %3435 = vmatpush3.bf16.msra.mxu1 %v4011_v23 }
 0x399   :  { %3436 = vmatprep.subr.bf16.mxu1 %v3797_v1 }
 0x39b   :  { %3426 = vmatpush3.bf16.msra.mxu0 %v4066_v50 }
 0x39c   :  { %3439 = vmatprep.subr.bf16.mxu0 %v3797_v1  ;;  %3438 = vmatpush3.bf16.msra.mxu1 %v4027_v28 }
 0x39d   :  { %3451 = vmatprep.subr.bf16.mxu1 %v3797_v1 }
 0x39e   :  { %3016 = vmatmul.mubr.msk.f32.vlgmr.msra.gmra.mrb[16].mxu0 %vm410_vm5, %v1148_v55 }
 0x39f   :  { %3441 = vmatpush3.bf16.msra.mxu0 %v4029_v29  ;;  %3053 = vmatprep.mubr.msk.f32.mxu0 %vm3798_vm0, %v3799_v2 }
 0x3a0   :  { %3442 = vmatprep.subr.bf16.mxu0 %v3797_v1 }
 0x3a3   :  { %3444 = vmatpush3.bf16.msra.mxu0 %v4037_v34 }
 0x3a4   :  { %3445 = vmatprep.subr.bf16.mxu0 %v3797_v1 }
 0x3a7   :  { %3447 = vmatpush3.bf16.msra.mxu0 %v4047_v40 }
 0x3a8   :  { %3448 = vmatprep.subr.bf16.mxu0 %v3797_v1 }
 0x3ab   :  { %3450 = vmatpush3.bf16.msra.mxu0 %v4057_v46 }
 0x3ac   :  { %3463 = vmatprep.subr.bf16.mxu0 %v3797_v1 }
 0x461   :  { %v1217_v56 = vpop.f32.mrb[14].mxu0  ;;  %v1287_v58 = vpop.f32.mrb[10].mxu1 }
 0x462   :  { %v1362_v59 = vrot.slane %v1217_v56, 2  ;;  %v2979_v60 = vpop.f32.mrb[15].mxu0  ;;  %v2998_v62 = vpop.f32.mrb[11].mxu1  ;;  %v1372_v4 = vrot.slane %v1287_v58, 2 }
 0x464   :  { %v1364_v0 = vadd.f32 %v1362_v59, %v4109_v63  ;;  %v1374_v5 = vadd.f32 %v1372_v4, %v4112_v6 }
 0x466   :  { %v2508_v3 = vmul.f32 -1.442695, %v1364_v0  ;;  %v2509_v12 = vmul.f32 -1.442695, %v1374_v5 }
 0x468   :  { %3624 = vpow2.f32 %v2508_v3 }
 0x471   :  { %v1357_v7 = vpop.f32.mrb[16].mxu0 }
 0x472   :  { %v3625_v8 = vpop.eup %3624  ;;  %v3017_v9 = vpop.f32.mrb[17].mxu0  ;;  %v1358_v13 = vadd.f32 %v4118_v16, %v1357_v7 }
 0x473   :  { %v1368_v10 = vadd.f32 1.0, %v3625_v8 }
 0x474   :  { %v1382_v14 = vrot.slane %v1358_v13, 2 }
 0x475   :  { %3626 = vrcp.f32 %v1368_v10 }
 0x476   :  { %3628 = vpow2.f32 %v2509_v12 }
 0x47f   :  { %v3627_v15 = vpop.eup %3626 }
 0x480   :  { %v1384_v17 = vmul.f32 %v3627_v15, %v1382_v14  ;;  %v3629_v63 = vpop.eup %3628 }
 0x481   :  { %v1378_v20 = vadd.f32 1.0, %v3629_v63 }
 0x482   :  { %v1385_v19 = vadd.f32 %v1384_v17, %v4121_v21 }
 0x484   :  { %3630 = vtanh.f32 %v1385_v19 }
 0x485   :  { %3632 = vrcp.f32 %v1378_v20 }
 0x48e   :  { %v3631_v22 = vpop.eup %3630 }
 0x48f   :  { %v1388_v6 = vrot.slane %v3631_v22, 2  ;;  %v3633_v26 = vpop.eup %3632 }
 0x491   :  { %v1390_v24 = vsub.f32 %v1146_v54, %v1388_v6 }
 0x493   :  { %v1392_v25 = vrot.slane %v1390_v24, 6 }
 0x495   :  { %v1394_v27 = vmul.f32 %v3633_v26, %v1392_v25 }
 0x497   :  { %v1395_v30 = vadd.f32 %v3631_v22, %v1394_v27 }
 0x499   :  { %v1397_v31 = vrot.slane %v1395_v30, 6 }
 0x49b   :  { %3035 = vmatmul.mubr.msk.f32.vlgmr.msra.gmra.mrb[12].mxu1 %vm410_vm5, %v1397_v31  ;;  %3054 = vmatmul.mubr.msk.f32.vlgmr.msra.gmra.mrb[18].mxu0 %vm410_vm5, %v1397_v31 }
 0x49c   :  { %3453 = vmatpush3.bf16.msra.mxu1 %v4039_v36  ;;  %3072 = vmatprep.mubr.msk.f32.mxu1 %vm3798_vm0, %v3799_v2 }
 0x49d   :  { %3454 = vmatprep.subr.bf16.mxu1 %v3797_v1  ;;  %3465 = vmatpush3.bf16.msra.mxu0 %v3979_v11 }
 0x49e   :  { %3466 = vmatprep.subr.bf16.mxu0 %v3797_v1  ;;  %3091 = vmatprep.mubr.msk.f32.mxu0 %vm3798_vm0, %v3799_v2 }
 0x4a0   :  { %3456 = vmatpush3.bf16.msra.mxu1 %v4050_v42 }
 0x4a1   :  { %3457 = vmatprep.subr.bf16.mxu1 %v3797_v1  ;;  %3468 = vmatpush3.bf16.msra.mxu0 %v3993_v18 }
 0x4a2   :  { %3469 = vmatprep.subr.bf16.mxu0 %v3797_v1 }
 0x4a4   :  { %3459 = vmatpush3.bf16.msra.mxu1 %v4060_v47 }
 0x4a5   :  { %3460 = vmatprep.subr.bf16.mxu1 %v3797_v1  ;;  %3471 = vmatpush3.bf16.msra.mxu0 %v4011_v23 }
 0x4a6   :  { %3472 = vmatprep.subr.bf16.mxu0 %v3797_v1 }
 0x4a8   :  { %3462 = vmatpush3.bf16.msra.mxu1 %v4066_v50 }
 0x4a9   :  { %3475 = vmatprep.subr.bf16.mxu1 %v3797_v1  ;;  %3474 = vmatpush3.bf16.msra.mxu0 %v4027_v28 }
 0x4aa   :  { %3487 = vmatprep.subr.bf16.mxu0 %v3797_v1 }
 0x4ab   :  { %3073 = vmatmul.mubr.msk.f32.vlgmr.msra.gmra.mrb[14].mxu1 %vm410_vm5, %v1397_v31 }
 0x4ac   :  { %3477 = vmatpush3.bf16.msra.mxu1 %v4029_v29  ;;  %3110 = vmatprep.mubr.msk.f32.mxu1 %vm3798_vm0, %v3799_v2 }
 0x4ad   :  { %3478 = vmatprep.subr.bf16.mxu1 %v3797_v1 }
 0x4b0   :  { %3480 = vmatpush3.bf16.msra.mxu1 %v4037_v34 }
 0x4b1   :  { %3481 = vmatprep.subr.bf16.mxu1 %v3797_v1 }
 0x4b4   :  { %3483 = vmatpush3.bf16.msra.mxu1 %v4047_v40 }
 0x4b5   :  { %3484 = vmatprep.subr.bf16.mxu1 %v3797_v1 }
 0x4b8   :  { %3486 = vmatpush3.bf16.msra.mxu1 %v4057_v46 }
 0x4b9   :  { %3499 = vmatprep.subr.bf16.mxu1 %v3797_v1 }
 0x56e   :  { %v1466_v21 = vpop.f32.mrb[12].mxu1  ;;  %v1536_v32 = vpop.f32.mrb[18].mxu0 }
 0x56f   :  { %v1610_v33 = vadd.f32 %v1466_v21, %v4097_v53  ;;  %v3036_v35 = vpop.f32.mrb[13].mxu1  ;;  %v3055_v37 = vpop.f32.mrb[19].mxu0  ;;  %v1617_v39 = vadd.f32 %v1536_v32, %v4102_v57 }
 0x571   :  { %v2513_v38 = vmul.f32 -1.442695, %v1610_v33  ;;  %v2514_v48 = vmul.f32 -1.442695, %v1617_v39 }
 0x573   :  { %3634 = vpow2.f32 %v2513_v38 }
 0x57d   :  { %v3635_v41 = vpop.eup %3634 }
 0x57e   :  { %v1614_v43 = vadd.f32 1.0, %v3635_v41  ;;  %v1606_v44 = vpop.f32.mrb[14].mxu1 }
 0x57f   :  { %v3074_v45 = vpop.f32.mrb[15].mxu1  ;;  %v1607_v49 = vadd.f32 %v4118_v16, %v1606_v44 }
 0x580   :  { %3636 = vrcp.f32 %v1614_v43 }
 0x581   :  { %3638 = vpow2.f32 %v2514_v48 }
 0x58a   :  { %v3637_v51 = vpop.eup %3636 }
 0x58b   :  { %v1624_v52 = vmul.f32 %v3637_v51, %v1607_v49  ;;  %v3639_v55 = vpop.eup %3638 }
 0x58c   :  { %v1621_v56 = vadd.f32 1.0, %v3639_v55 }
 0x58d   :  { %v1625_v54 = vadd.f32 %v1624_v52, %v4107_v61 }
 0x58f   :  { %3640 = vtanh.f32 %v1625_v54 }
 0x590   :  { %3642 = vrcp.f32 %v1621_v56 }
 0x599   :  { %v3641_v58 = vpop.eup %3640 }
 0x59a   :  { %v1628_v59 = vrot.slane %v3641_v58, 2  ;;  %v3643_v0 = vpop.eup %3642 }
 0x59c   :  { %v1630_v60 = vsub.f32 %v1395_v30, %v1628_v59 }
 0x59e   :  { %v1632_v62 = vrot.slane %v1630_v60, 6 }
 0x5a0   :  { %v1634_v3 = vmul.f32 %v3643_v0, %v1632_v62 }
 0x5a2   :  { %v1635_v4 = vadd.f32 %v3641_v58, %v1634_v3 }
 0x5a4   :  { %3092 = vmatmul.mubr.msk.f32.vlgmr.msra.gmra.mrb[20].mxu0 %vm410_vm5, %v1635_v4  ;;  %3111 = vmatmul.mubr.msk.f32.vlgmr.msra.gmra.mrb[16].mxu1 %vm410_vm5, %v1635_v4 }
 0x5a5   :  { %3489 = vmatpush3.bf16.msra.mxu0 %v4039_v36  ;;  %3129 = vmatprep.mubr.msk.f32.mxu0 %vm3798_vm0, %v3799_v2 }
 0x5a6   :  { %3490 = vmatprep.subr.bf16.mxu0 %v3797_v1  ;;  %3501 = vmatpush3.bf16.msra.mxu1 %v3979_v11 }
 0x5a7   :  { %3502 = vmatprep.subr.bf16.mxu1 %v3797_v1  ;;  %3148 = vmatprep.mubr.msk.f32.mxu1 %vm3798_vm0, %v3799_v2 }
 0x5a9   :  { %3492 = vmatpush3.bf16.msra.mxu0 %v4050_v42 }
 0x5aa   :  { %3493 = vmatprep.subr.bf16.mxu0 %v3797_v1  ;;  %3504 = vmatpush3.bf16.msra.mxu1 %v3993_v18 }
 0x5ab   :  { %3505 = vmatprep.subr.bf16.mxu1 %v3797_v1 }
 0x5ad   :  { %3495 = vmatpush3.bf16.msra.mxu0 %v4060_v47 }
 0x5ae   :  { %3496 = vmatprep.subr.bf16.mxu0 %v3797_v1  ;;  %3507 = vmatpush3.bf16.msra.mxu1 %v4011_v23 }
 0x5af   :  { %3508 = vmatprep.subr.bf16.mxu1 %v3797_v1 }
 0x5b1   :  { %3498 = vmatpush3.bf16.msra.mxu0 %v4066_v50 }
 0x5b2   :  { %3511 = vmatprep.subr.bf16.mxu0 %v3797_v1  ;;  %3510 = vmatpush3.bf16.msra.mxu1 %v4027_v28 }
 0x5b3   :  { %3523 = vmatprep.subr.bf16.mxu1 %v3797_v1 }
 0x5b4   :  { %3130 = vmatmul.mubr.msk.f32.vlgmr.msra.gmra.mrb[22].mxu0 %vm410_vm5, %v1635_v4 }
 0x5b5   :  { %3513 = vmatpush3.bf16.msra.mxu0 %v4029_v29  ;;  %3167 = vmatprep.mubr.msk.f32.mxu0 %vm3798_vm0, %v3799_v2 }
 0x5b6   :  { %3514 = vmatprep.subr.bf16.mxu0 %v3797_v1 }
 0x5b9   :  { %3516 = vmatpush3.bf16.msra.mxu0 %v4037_v34 }
 0x5ba   :  { %3517 = vmatprep.subr.bf16.mxu0 %v3797_v1 }
 0x5bd   :  { %3519 = vmatpush3.bf16.msra.mxu0 %v4047_v40 }
 0x5be   :  { %3520 = vmatprep.subr.bf16.mxu0 %v3797_v1 }
 0x5c1   :  { %3522 = vmatpush3.bf16.msra.mxu0 %v4057_v46 }
 0x5c2   :  { %3535 = vmatprep.subr.bf16.mxu0 %v3797_v1 }
 0x677   :  { %v1705_v5 = vpop.f32.mrb[20].mxu0  ;;  %v1775_v7 = vpop.f32.mrb[16].mxu1 }
 0x678   :  { %v1850_v8 = vrot.slane %v1705_v5, 6  ;;  %v3093_v9 = vpop.f32.mrb[21].mxu0  ;;  %v3112_v10 = vpop.f32.mrb[17].mxu1  ;;  %v1860_v14 = vrot.slane %v1775_v7, 6 }
 0x67a   :  { %v1852_v12 = vadd.f32 %v1850_v8, %v4097_v53  ;;  %v1862_v15 = vadd.f32 %v1860_v14, %v4102_v57 }
 0x67c   :  { %v2518_v13 = vmul.f32 -1.442695, %v1852_v12  ;;  %v2519_v22 = vmul.f32 -1.442695, %v1862_v15  ;;  %v2386_v12 = vld [vmem:[%s4406_s11 + $0x20] sm:$0xff]  ;;  %v2388_v15 = vld [vmem:[%s4406_s11 + $0x30] sm:$0xff] }
 0x67e   :  { %3644 = vpow2.f32 %v2518_v13  ;;  %v2387_v13 = vld [vmem:[%s4406_s11 + $0x28] sm:$0xff] }
 0x67f   :  { %v3578_v14 = vpack.c.bf16 %v2387_v13, %v2386_v12 }
 0x687   :  { %v1845_v17 = vpop.f32.mrb[22].mxu0 }
 0x688   :  { %v3645_v19 = vpop.eup %3644  ;;  %v3131_v63 = vpop.f32.mrb[23].mxu0  ;;  %v1846_v6 = vadd.f32 %v4118_v16, %v1845_v17  ;;  %v2389_v17 = vld [vmem:[%s4406_s11 + $0x38] sm:$0xff] }
 0x689   :  { %v1856_v20 = vadd.f32 1.0, %v3645_v19  ;;  %v3581_v19 = vpack.c.bf16 %v2389_v17, %v2388_v15 }
 0x68a   :  { %v1870_v24 = vrot.slane %v1846_v6, 6 }
 0x68b   :  { %3646 = vrcp.f32 %v1856_v20 }
 0x68c   :  { %3648 = vpow2.f32 %v2519_v22 }
 0x695   :  { %v3647_v25 = vpop.eup %3646 }
 0x696   :  { %v1872_v26 = vmul.f32 %v3647_v25, %v1870_v24  ;;  %v3649_v30 = vpop.eup %3648 }
 0x697   :  { %v1866_v31 = vadd.f32 1.0, %v3649_v30 }
 0x698   :  { %v1873_v27 = vadd.f32 %v1872_v26, %v4107_v61 }
 0x69a   :  { %3650 = vtanh.f32 %v1873_v27 }
 0x69b   :  { %3652 = vrcp.f32 %v1866_v31 }
 0x6a4   :  { %v3651_v21 = vpop.eup %3650 }
 0x6a5   :  { %v1876_v32 = vrot.slane %v3651_v21, 2  ;;  %v3653_v37 = vpop.eup %3652 }
 0x6a7   :  { %v1878_v33 = vsub.f32 %v1635_v4, %v1876_v32 }
 0x6a9   :  { %v1880_v35 = vrot.slane %v1878_v33, 6 }
 0x6ab   :  { %v1882_v38 = vmul.f32 %v3653_v37, %v1880_v35 }
 0x6ad   :  { %v1883_v39 = vadd.f32 %v3651_v21, %v1882_v38 }
 0x6af   :  { %v1885_v41 = vrot.slane %v1883_v39, 2 }
 0x6b1   :  { %3149 = vmatmul.mubr.msk.f32.vlgmr.msra.gmra.mrb[18].mxu1 %vm410_vm5, %v1885_v41  ;;  %3168 = vmatmul.mubr.msk.f32.vlgmr.msra.gmra.mrb[24].mxu0 %vm410_vm5, %v1885_v41 }
 0x6b2   :  { %3525 = vmatpush3.bf16.msra.mxu1 %v4039_v36  ;;  %3186 = vmatprep.mubr.msk.f32.mxu1 %vm3798_vm0, %v3799_v2 }
 0x6b3   :  { %3526 = vmatprep.subr.bf16.mxu1 %v3797_v1  ;;  %3537 = vmatpush3.bf16.msra.mxu0 %v3979_v11 }
 0x6b4   :  { %3538 = vmatprep.subr.bf16.mxu0 %v3797_v1  ;;  %3205 = vmatprep.mubr.msk.f32.mxu0 %vm3798_vm0, %v3799_v2 }
 0x6b6   :  { %3528 = vmatpush3.bf16.msra.mxu1 %v4050_v42 }
 0x6b7   :  { %3529 = vmatprep.subr.bf16.mxu1 %v3797_v1  ;;  %3540 = vmatpush3.bf16.msra.mxu0 %v3993_v18 }
 0x6b8   :  { %3541 = vmatprep.subr.bf16.mxu0 %v3797_v1 }
 0x6ba   :  { %3531 = vmatpush3.bf16.msra.mxu1 %v4060_v47 }
 0x6bb   :  { %3532 = vmatprep.subr.bf16.mxu1 %v3797_v1  ;;  %3543 = vmatpush3.bf16.msra.mxu0 %v4011_v23 }
 0x6bc   :  { %3544 = vmatprep.subr.bf16.mxu0 %v3797_v1 }
 0x6be   :  { %3534 = vmatpush3.bf16.msra.mxu1 %v4066_v50 }
 0x6bf   :  { %3547 = vmatprep.subr.bf16.mxu1 %v3797_v1  ;;  %3546 = vmatpush3.bf16.msra.mxu0 %v4027_v28 }
 0x6c0   :  { %3559 = vmatprep.subr.bf16.mxu0 %v3797_v1 }
 0x6c1   :  { %3187 = vmatmul.mubr.msk.f32.vlgmr.msra.gmra.mrb[20].mxu1 %vm410_vm5, %v1885_v41 }
 0x6c2   :  { %3549 = vmatpush3.bf16.msra.mxu1 %v4029_v29  ;;  %3224 = vmatprep.mubr.msk.f32.mxu1 %vm3798_vm0, %v3799_v2 }
 0x6c3   :  { %3550 = vmatprep.subr.bf16.mxu1 %v3797_v1 }
 0x6c6   :  { %3552 = vmatpush3.bf16.msra.mxu1 %v4037_v34 }
 0x6c7   :  { %3553 = vmatprep.subr.bf16.mxu1 %v3797_v1 }
 0x6ca   :  { %3555 = vmatpush3.bf16.msra.mxu1 %v4047_v40 }
 0x6cb   :  { %3556 = vmatprep.subr.bf16.mxu1 %v3797_v1 }
 0x6ce   :  { %3558 = vmatpush3.bf16.msra.mxu1 %v4057_v46 }
 0x6cf   :  { %3571 = vmatprep.subr.bf16.mxu1 %v3797_v1 }
 0x784   :  { %v1954_v11 = vpop.f32.mrb[18].mxu1  ;;  %v2024_v18 = vpop.f32.mrb[24].mxu0 }
 0x785   :  { %v2099_v23 = vrot.slane %v1954_v11, 4  ;;  %v3150_v28 = vpop.f32.mrb[19].mxu1  ;;  %v3169_v29 = vpop.f32.mrb[25].mxu0  ;;  %v2109_v34 = vrot.slane %v2024_v18, 4 }
 0x787   :  { %v2101_v43 = vadd.f32 %v2099_v23, %v4097_v53  ;;  %v2111_v45 = vadd.f32 %v2109_v34, %v4102_v57 }
 0x789   :  { %v2523_v44 = vmul.f32 -1.442695, %v2101_v43  ;;  %v2524_v46 = vmul.f32 -1.442695, %v2111_v45 }
 0x78b   :  { %3654 = vpow2.f32 %v2523_v44 }
 0x794   :  { %v2094_v48 = vpop.f32.mrb[20].mxu1 }
 0x795   :  { %v3655_v40 = vpop.eup %3654  ;;  %v3188_v49 = vpop.f32.mrb[21].mxu1  ;;  %v2095_v52 = vadd.f32 %v4118_v16, %v2094_v48 }
 0x796   :  { %v2105_v51 = vadd.f32 1.0, %v3655_v40 }
 0x797   :  { %v2119_v54 = vrot.slane %v2095_v52, 4 }
 0x798   :  { %3656 = vrcp.f32 %v2105_v51 }
 0x799   :  { %3658 = vpow2.f32 %v2524_v46 }
 0x7a2   :  { %v3657_v55 = vpop.eup %3656 }
 0x7a3   :  { %v2121_v56 = vmul.f32 %v3657_v55, %v2119_v54  ;;  %v3659_v59 = vpop.eup %3658 }
 0x7a4   :  { %v2115_v60 = vadd.f32 1.0, %v3659_v59 }
 0x7a5   :  { %v2122_v58 = vadd.f32 %v2121_v56, %v4107_v61 }
 0x7a7   :  { %3660 = vtanh.f32 %v2122_v58 }
 0x7a8   :  { %3662 = vrcp.f32 %v2115_v60 }
 0x7b1   :  { %v3661_v62 = vpop.eup %3660 }
 0x7b2   :  { %v2125_v0 = vrot.slane %v3661_v62, 2  ;;  %v3663_v5 = vpop.eup %3662 }
 0x7b4   :  { %v2127_v3 = vsub.f32 %v1883_v39, %v2125_v0 }
 0x7b6   :  { %v2129_v4 = vrot.slane %v2127_v3, 6 }
 0x7b8   :  { %v2131_v7 = vmul.f32 %v3663_v5, %v2129_v4 }
 0x7ba   :  { %v2132_v8 = vadd.f32 %v3661_v62, %v2131_v7 }
 0x7bc   :  { %v2134_v9 = vrot.slane %v2132_v8, 4 }
 0x7be   :  { %3206 = vmatmul.mubr.msk.f32.vlgmr.msra.gmra.mrb[26].mxu0 %vm410_vm5, %v2134_v9  ;;  %3225 = vmatmul.mubr.msk.f32.vlgmr.msra.gmra.mrb[22].mxu1 %vm410_vm5, %v2134_v9 }
 0x7bf   :  { %3561 = vmatpush3.bf16.msra.mxu0 %v4039_v36  ;;  %3243 = vmatprep.mubr.msk.f32.mxu0 %vm3798_vm0, %v3799_v2  ;;  %v2382_v36 = vld [vmem:[%s4406_s11] sm:$0xff] }
 0x7c0   :  { %3562 = vmatprep.subr.bf16.mxu0 %v3797_v1  ;;  %3262 = vmatprep.mubr.msk.f32.mxu1 %vm3798_vm0, %v3799_v2  ;;  %v2383_v2 = vld [vmem:[%s4406_s11 + $0x8] sm:$0xff] }
 0x7c1   :  { %v3572_v10 = vpack.c.bf16 %v2383_v2, %v2382_v36 }
 0x7c3   :  { %3564 = vmatpush3.bf16.msra.mxu0 %v4050_v42  ;;  %3573 = vmatpush3.bf16.msra.mxu1 %v3572_v10  ;;  %v2384_v42 = vld [vmem:[%s4406_s11 + $0x10] sm:$0xff] }
 0x7c4   :  { %3565 = vmatprep.subr.bf16.mxu0 %v3797_v1  ;;  %3574 = vmatprep.subr.bf16.mxu1 %v3797_v1 }
 0x7c7   :  { %3567 = vmatpush3.bf16.msra.mxu0 %v4060_v47  ;;  %v2385_v47 = vld [vmem:[%s4406_s11 + $0x18] sm:$0xff] }
 0x7c8   :  { %3568 = vmatprep.subr.bf16.mxu0 %v3797_v1 }
 0x7cb   :  { %3570 = vmatpush3.bf16.msra.mxu0 %v4066_v50  ;;  %v3575_v50 = vpack.c.bf16 %v2385_v47, %v2384_v42 }
 0x7cd   :  { %3576 = vmatpush3.bf16.msra.mxu1 %v3575_v50 }
 0x7ce   :  { %3244 = vmatmul.mubr.msk.f32.vlgmr.msra.gmra.mrb[28].mxu0 %vm410_vm5, %v2134_v9  ;;  %3577 = vmatprep.subr.bf16.mxu1 %v3797_v1 }
 0x7d1   :  { %3579 = vmatpush3.bf16.msra.mxu1 %v3578_v14 }
 0x7d2   :  { %3580 = vmatprep.subr.bf16.mxu1 %v3797_v1 }
 0x7d5   :  { %3582 = vmatpush3.bf16.msra.mxu1 %v3581_v19 }
 0x891   :  { %v2203_v63 = vpop.f32.mrb[26].mxu0  ;;  %v2273_v20 = vpop.f32.mrb[22].mxu1 }
 0x892   :  { %v2348_v22 = vrot.slane %v2203_v63, 2  ;;  %v3207_v6 = vpop.f32.mrb[27].mxu0  ;;  %v3226_v24 = vpop.f32.mrb[23].mxu1  ;;  %v2358_v27 = vrot.slane %v2273_v20, 2 }
 0x894   :  { %v2350_v25 = vadd.f32 %v2348_v22, %v4097_v53  ;;  %v2360_v30 = vadd.f32 %v2358_v27, %v4102_v57 }
 0x896   :  { %v2528_v26 = vmul.f32 -1.442695, %v2350_v25  ;;  %v2529_v35 = vmul.f32 -1.442695, %v2360_v30 }
 0x898   :  { %3664 = vpow2.f32 %v2528_v26 }
 0x8a1   :  { %v2343_v31 = vpop.f32.mrb[28].mxu0 }
 0x8a2   :  { %v3665_v21 = vpop.eup %3664  ;;  %v3245_v32 = vpop.f32.mrb[29].mxu0  ;;  %v2344_v1 = vadd.f32 %v4118_v16, %v2343_v31  ;;  %v2530_v16 = vld [vmem:[#allocation2] ss:$0 sm:$0xff] }
 0x8a3   :  { %v2354_v33 = vadd.f32 1.0, %v3665_v21 }
 0x8a4   :  { %v2368_v37 = vrot.slane %v2344_v1, 2 }
 0x8a5   :  { %3666 = vrcp.f32 %v2354_v33 }
 0x8a6   :  { %3668 = vpow2.f32 %v2529_v35 }
 0x8af   :  { %v3667_v38 = vpop.eup %3666 }
 0x8b0   :  { %v2370_v39 = vmul.f32 %v3667_v38, %v2368_v37  ;;  %v3669_v53 = vpop.eup %3668 }
 0x8b1   :  { %v2364_v11 = vadd.f32 1.0, %v3669_v53 }
 0x8b2   :  { %v2371_v41 = vadd.f32 %v2370_v39, %v4107_v61 }
 0x8b4   :  { %3670 = vtanh.f32 %v2371_v41 }
 0x8b5   :  { %3672 = vrcp.f32 %v2364_v11 }
 0x8be   :  { %v3671_v18 = vpop.eup %3670 }
 0x8bf   :  { %v2374_v57 = vrot.slane %v3671_v18, 2  ;;  %v3673_v29 = vpop.eup %3672 }
 0x8c1   :  { %v2376_v23 = vsub.f32 %v2132_v8, %v2374_v57 }
 0x8c3   :  { %v2378_v28 = vrot.slane %v2376_v23, 6 }
 0x8c5   :  { %v2380_v43 = vmul.f32 %v3673_v29, %v2378_v28 }
 0x8c7   :  { %v2381_v44 = vadd.f32 %v3671_v18, %v2380_v43 }
 0x8c9   :  { %v2398_v34 = vrot.slane %v2381_v44, 6 }
 0x8cb   :  { %3263 = vmatmul.mubr.msk.f32.vlgmr.msra.gmra.mrb[24].mxu1 %vm410_vm5, %v2398_v34 }
 0x99e   :  { %v2467_v45 = vpop.f32.mrb[24].mxu1 }
 0x99f   :  { %v2468_v48 = vadd.f32 %v2530_v16, %v2467_v45  ;;  %v3264_v40 = vpop.f32.mrb[25].mxu1 }
 0x9a1   :  { %2472 = vst.msk [vmem:[%s4408_s13] sm:$0x3] %vm2471_vm6, %v2468_v48 }
 0x9a2   :  { %2477 = vsyncpa [#allocation4], 1 }
 0x9a3   :  { %2478 = vsyncpa [#allocation6], 1 }
 0x9a4   :  { %2479 = vsyncpa [#allocation9], 1 }

</bundles_post_ra>
